<compile_context>
chip_gen: v5e
topology: v5e:2x2
jax: 0.10.0
libtpu: 0.0.40
codegen_flags: <defaults>
</compile_context>

<pallas_src>
import math
import functools

import jax
import jax.numpy as jnp
from jax.experimental import pallas as pl
from jax.experimental.pallas import tpu as pltpu


# ----------------------------- config switches -------------------------------

# tanh-approx GELU runs on the EUP (transcendental slot) instead of a long VPU
# erf polynomial; max deviation from torch's exact erf GELU is ~1e-3.
_GELU_APPROX_TANH = True


# ----------------------------- in-kernel helpers -----------------------------

def _gelu(x):
    if _GELU_APPROX_TANH:
        c = math.sqrt(2.0 / math.pi)
        return 0.5 * x * (1.0 + jnp.tanh(c * (x + 0.044715 * (x * x * x))))
    # torch.nn.functional.gelu default (erf-based, exact).
    return 0.5 * x * (1.0 + jax.lax.erf(x * (1.0 / math.sqrt(2.0))))


def _layernorm(x, g, b, eps=1e-5):
    mu = jnp.mean(x, axis=-1, keepdims=True)
    var = jnp.mean((x - mu) ** 2, axis=-1, keepdims=True)
    return (x - mu) * jax.lax.rsqrt(var + eps) * g + b


# ------------------------- hardware / tiling helpers --------------------------

def _tpu_info():
    try:
        return pltpu.get_tpu_info()
    except Exception:
        return None


def _vmem_capacity_bytes():
    info = _tpu_info()
    cap = getattr(info, "vmem_capacity_bytes", None) if info is not None else None
    if not cap:
        cap = 64 * 1024 * 1024          # conservative default (v7x per-core VMEM)
    return int(cap)


def _vmem_limit(estimate_bytes):
    """~1.5x the analytic need (headroom for compiler-materialized temporaries),
    never more than 75% of physical VMEM (room for Mosaic internal scratch)."""
    cap = _vmem_capacity_bytes()
    want = int(estimate_bytes * 1.5) + (4 << 20)
    return int(max(16 << 20, min(want, int(cap * 0.75))))


def _prefers_128_blocks():
    """v2-v5 generations have a 128-wide MXU; prefer 128-row seq blocks there."""
    info = _tpu_info()
    ver = str(getattr(info, "chip_version", "")).lower() if info is not None else ""
    return any(tag in ver for tag in ("v2", "v3", "v4", "v5"))


def _pick_block(dim, target, mults):
    """Largest divisor of `dim` that is <= target and a multiple of one of
    `mults` (tried in order); falls back to the full dim (always valid)."""
    if dim <= target:
        return dim
    for mult in mults:
        start = target - target % mult
        for cand in range(start, 0, -mult):
            if dim % cand == 0:
                return cand
    return dim


def _layer_vmem_estimate(H, F, blk, n_heads):
    M = H // n_heads
    naug = M + 1 if (M % 128) else M
    weights = (3 * H * H + 2 * H * F) * 2               # bf16, single-buffered
    consts = (6 * H + F) * 4                            # biases / LN params (f32)
    xio = 2 * 2 * blk * H * 4                           # x + out tiles, double-buffered
    scratch = n_heads * (M * naug + M) * 4              # kv + ksum carry state
    temps = (n_heads * blk * blk * 6                    # diagonal scores (f32 + bf16)
             + n_heads * blk * (3 * M + 2 * naug) * 6   # per-head q/k/v + num/den
             + blk * (6 * H + 2 * F) * 4)               # FFN / residual temporaries
    return weights + consts + xio + scratch + temps


def _logits_vmem_estimate(H, blk_l, blk_v):
    return (2 * (blk_l * H * 4 + H * blk_v * 2 + blk_v * 4 + blk_l * blk_v * 4)
            + blk_l * blk_v * 4)


def _single_buffered_spec(shape, index_map):
    # Constant index map -> the second pipeline buffer is pure VMEM waste.
    try:
        return pl.BlockSpec(shape, index_map, pipeline_mode=pl.Buffered(1))
    except Exception:
        return pl.BlockSpec(shape, index_map)


# ------------------------------- layer kernel --------------------------------

def slim_layer_kernel(x_ref,
                      ln1_g_ref, ln1_b_ref,
                      wq_ref, bq_ref, wk_ref, bk_ref, wv_ref, bv_ref,
                      ln2_g_ref, ln2_b_ref,
                      wu_ref, bu_ref, wvf_ref, bvf_ref,
                      o_ref,
                      kv_ref, ksum_ref,
                      *, n_heads):
    """One SLiMPerformerLayer.full_forward, one (batch, seq-block) grid step.

    kv_ref  : (n_heads, M, Maug) f32 running sum of k^T [v | 1] over previous
              blocks (Maug = M+1 when the denominator is folded in).
    ksum_ref: (n_heads, 1, M) f32 running sum of k (only used when M % 128 == 0).
    """
    blk = x_ref.shape[1]
    H = x_ref.shape[2]
    M = H // n_heads
    fold_den = kv_ref.shape[2] == M + 1   # denominator folded into kv state

    # Reset the carried prefix-sum state at the start of every sequence.
    @pl.when(pl.program_id(1) == 0)
    def _():
        kv_ref[...] = jnp.zeros_like(kv_ref)
        ksum_ref[...] = jnp.zeros_like(ksum_ref)

    x = x_ref[0]                                          # (blk, H) f32

    # ---------------- attention (feature_type='relu', compute_type='ps') ----
    xn = _layernorm(x, ln1_g_ref[...], ln1_b_ref[...])
    xb = xn.astype(jnp.bfloat16)
    q = jnp.maximum(jnp.dot(xb, wq_ref[...],
                            preferred_element_type=jnp.float32) + bq_ref[...], 0.0)
    k = jnp.maximum(jnp.dot(xb, wk_ref[...],
                            preferred_element_type=jnp.float32) + bk_ref[...], 0.0)
    v = jnp.dot(xb, wv_ref[...],
                preferred_element_type=jnp.float32) + bv_ref[...]

    # Batch heads: (blk, H) -> (n_heads, blk, M); bf16 MXU operands.
    q3b = jnp.swapaxes(q.reshape(blk, n_heads, M), 0, 1).astype(jnp.bfloat16)
    k3b = jnp.swapaxes(k.reshape(blk, n_heads, M), 0, 1).astype(jnp.bfloat16)
    v3b = jnp.swapaxes(v.reshape(blk, n_heads, M), 0, 1).astype(jnp.bfloat16)

    # Within-block (diagonal) causal scores — only (blk, blk) per head.
    row = jax.lax.broadcasted_iota(jnp.int32, (blk, blk), 0)
    col = jax.lax.broadcasted_iota(jnp.int32, (blk, blk), 1)
    s = jnp.einsum('hqm,hkm->hqk', q3b, k3b,
                   preferred_element_type=jnp.float32)    # (nh, blk, blk)
    s = jnp.where((col <= row)[None, :, :], s, 0.0).astype(jnp.bfloat16)

    kvb = kv_ref[...].astype(jnp.bfloat16)

    if fold_den:
        # Denominator folded into the matmuls via a ones column appended to v:
        # the MXU output tile is already lane-padded past M, so the extra
        # column is free, and num/den see identically-rounded bf16 operands.
        v_aug = jnp.concatenate([v3b, jnp.ones_like(v3b[..., :1])], axis=-1)
        nd = jnp.einsum('hqm,hmn->hqn', q3b, kvb,
                        preferred_element_type=jnp.float32)        # prefix blocks
        nd = nd + jnp.einsum('hqk,hkn->hqn', s, v_aug,
                             preferred_element_type=jnp.float32)   # diagonal block
        num = nd[..., :M]
        den = nd[..., M:]
        kv_ref[...] += jnp.einsum('hkm,hkn->hmn', k3b, v_aug,
                                  preferred_element_type=jnp.float32)
    else:
        # M is a multiple of 128: keep the kv state un-augmented; compute the
        # denominator on the VPU (prefix) / XLU (diagonal) instead of an N=1
        # MXU matmul.
        num = jnp.einsum('hqm,hmn->hqn', q3b, kvb,
                         preferred_element_type=jnp.float32)
        num = num + jnp.einsum('hqk,hkm->hqm', s, v3b,
                               preferred_element_type=jnp.float32)
        den = jnp.sum(q3b.astype(jnp.float32) * ksum_ref[...],
                      axis=-1, keepdims=True)
        den = den + jnp.sum(s.astype(jnp.float32), axis=-1, keepdims=True)
        kv_ref[...] += jnp.einsum('hkm,hkn->hmn', k3b, v3b,
                                  preferred_element_type=jnp.float32)
        ksum_ref[...] += jnp.sum(k3b.astype(jnp.float32), axis=1, keepdims=True)

    # EUP approximate reciprocal (~2^-12 rel. error vs the reference's divide).
    att3 = num * pl.reciprocal(den + 1e-16, approx=True)  # (nh, blk, M)
    att = jnp.swapaxes(att3, 0, 1).reshape(blk, H)
    x = x + att

    # ---------------- two FFN blocks sharing layernorm2 / U_map / V_map -----
    for _ in range(2):
        skip = x
        xn = _layernorm(x, ln2_g_ref[...], ln2_b_ref[...])
        h1 = jnp.dot(xn.astype(jnp.bfloat16), wu_ref[...],
                     preferred_element_type=jnp.float32) + bu_ref[...]
        h1 = _gelu(h1)
        x = skip + jnp.dot(h1.astype(jnp.bfloat16), wvf_ref[...],
                           preferred_element_type=jnp.float32) + bvf_ref[...]

    o_ref[0] = x


def slim_layer(x, params, n_heads, blk):
    B, L, H = x.shape
    F = params["wu"].shape[1]
    assert H % n_heads == 0 and L % blk == 0
    M = H // n_heads
    naug = M + 1 if (M % 128) else M

    def const(shape):
        return _single_buffered_spec(shape, lambda b, l: (0, 0))

    vmem_limit = _vmem_limit(_layer_vmem_estimate(H, F, blk, n_heads))

    # NOTE: on v7x at B==1 the "arbitrary" seq axis serializes the FFN on one
    # TensorCore; splitting the FFN into its own fully-parallel pallas_call
    # would ~2x FFN throughput there at the cost of an extra HBM round trip.
    return pl.pallas_call(
        functools.partial(slim_layer_kernel, n_heads=n_heads),
        out_shape=jax.ShapeDtypeStruct((B, L, H), jnp.float32),
        grid_spec=pltpu.PrefetchScalarGridSpec(
            num_scalar_prefetch=0,
            grid=(B, L // blk),                 # seq-block axis carries state
            in_specs=[
                pl.BlockSpec((1, blk, H), lambda b, l: (b, l, 0)),   # x
                const((1, H)), const((1, H)),                        # ln1 g, b
                const((H, H)), const((1, H)),                        # Wq, bq
                const((H, H)), const((1, H)),                        # Wk, bk
                const((H, H)), const((1, H)),                        # Wv, bv
                const((1, H)), const((1, H)),                        # ln2 g, b
                const((H, F)), const((1, F)),                        # Wu, bu
                const((F, H)), const((1, H)),                        # Wvf, bvf
            ],
            out_specs=pl.BlockSpec((1, blk, H), lambda b, l: (b, l, 0)),
            scratch_shapes=[
                pltpu.VMEM((n_heads, M, naug), jnp.float32),  # sum k^T [v | 1]
                pltpu.VMEM((n_heads, 1, M), jnp.float32),     # sum k (fallback)
            ],
        ),
        compiler_params=pltpu.CompilerParams(
            dimension_semantics=("parallel", "arbitrary"),
            vmem_limit_bytes=vmem_limit),
    )(x,
      params["ln1_g"], params["ln1_b"],
      params["wq"], params["bq"], params["wk"], params["bk"],
      params["wv"], params["bv"],
      params["ln2_g"], params["ln2_b"],
      params["wu"], params["bu"], params["wvf"], params["bvf"])


# ------------------------------ logits kernel --------------------------------

def logits_kernel(x_ref, w_ref, b_ref, o_ref):
    o_ref[0] = (jnp.dot(x_ref[0].astype(jnp.bfloat16), w_ref[...],
                        preferred_element_type=jnp.float32) + b_ref[...])


def output_logits(x, w, b, blk_l, blk_v):
    B, L, H = x.shape
    V = w.shape[1]
    assert L % blk_l == 0 and V % blk_v == 0
    vmem_limit = _vmem_limit(_logits_vmem_estimate(H, blk_l, blk_v))
    return pl.pallas_call(
        logits_kernel,
        out_shape=jax.ShapeDtypeStruct((B, L, V), jnp.float32),
        grid_spec=pltpu.PrefetchScalarGridSpec(
            num_scalar_prefetch=0,
            # Vocab axis OUTERMOST: each (H, blk_v) weight tile is DMA'd from
            # HBM exactly once and reused across all (batch, seq) tiles;
            # output tiles stay lane-dense (blk_v wide).
            grid=(V // blk_v, B, L // blk_l),
            in_specs=[
                pl.BlockSpec((1, blk_l, H), lambda v, b, l: (b, l, 0)),
                pl.BlockSpec((H, blk_v), lambda v, b, l: (0, v)),
                pl.BlockSpec((1, blk_v), lambda v, b, l: (0, v)),
            ],
            out_specs=pl.BlockSpec((1, blk_l, blk_v), lambda v, b, l: (b, l, v)),
        ),
        compiler_params=pltpu.CompilerParams(
            dimension_semantics=("parallel", "parallel", "parallel"),
            vmem_limit_bytes=vmem_limit),
    )(x, w, b)


# --------------------------- model glue (plain JAX) ---------------------------

def concat_pos_embs(x, start_index, vocab_dim):
    # Mirrors SLiMPerformer._concat_pos_embs.
    pos_emb_size = vocab_dim // 2
    B, T, _ = x.shape
    positions = jnp.arange(start_index, start_index + T, dtype=x.dtype)
    freqs = jnp.exp(jnp.arange(0, pos_emb_size, 2, dtype=x.dtype) *
                    (-math.log(10000.0) / pos_emb_size))
    args = positions[None, :, None] * freqs[None, None, :]
    sin_pe = jnp.sin(args) * jnp.ones_like(x[:, :1, :1])
    cos_pe = jnp.cos(args) * jnp.ones_like(x[:, :1, :1])
    return jnp.concatenate([x, sin_pe, cos_pe], axis=2)


def slim_performer_forward(tokens, params, cfg):
    vocab_dim = cfg["vocab_dim"]
    hidden_dim = cfg["hidden_dim"]
    scale = hidden_dim // vocab_dim

    # Embedding lookup (gather glue) + positional embeddings (plain JAX).
    x = params["emb"][tokens]                                  # (B, T, vocab_dim//2)
    x = concat_pos_embs(x, 0, vocab_dim)                       # (B, T, vocab_dim)
    B, T, vlen = x.shape
    x = x.reshape(B, T // scale, vlen * scale).astype(jnp.float32)  # (B, L, H)
    L = x.shape[1]

    # Seq block: multiple of the MXU row width (128 on v5e-, 256 on v6e/v7x).
    if _prefers_128_blocks():
        blk = _pick_block(L, 128, (128, 8))
    else:
        blk = _pick_block(L, 256, (256, 128, 8))
    for layer_params in params["layers"]:
        x = slim_layer(x, layer_params, cfg["n_heads"], blk)

    V = params["w_out"].shape[1]
    blk_l = _pick_block(L, 256, (256, 128, 8))
    blk_v = _pick_block(V, 4096, (512, 256, 128))
    return output_logits(x, params["w_out"], params["b_out"], blk_l, blk_v)


# ------------------------------- param init ----------------------------------

def init_params(key, cfg):
    V, vd, H, F = cfg["vocab_size"], cfg["vocab_dim"], cfg["hidden_dim"], cfg["ffn_dim"]
    n_layers = cfg["n_layers"]

    def nrm(k, shape, scale=0.05):
        return scale * jax.random.normal(k, shape, dtype=jnp.float32)

    def wgt(k, shape):                       # bf16 MXU operand storage
        return nrm(k, shape).astype(jnp.bfloat16)

    keys = jax.random.split(key, 2 + n_layers)
    params = {
        "emb": nrm(keys[0], (V, vd // 2), 1.0),
        "w_out": wgt(keys[1], (H, V)),
        "b_out": jnp.zeros((1, V), jnp.float32),
        "layers": [],
    }
    for li in range(n_layers):
        lk = jax.random.split(keys[2 + li], 8)
        params["layers"].append({
            "ln1_g": jnp.ones((1, H), jnp.float32),
            "ln1_b": jnp.zeros((1, H), jnp.float32),
            "wq": wgt(lk[0], (H, H)), "bq": nrm(lk[1], (1, H), 0.01),
            "wk": wgt(lk[2], (H, H)), "bk": nrm(lk[3], (1, H), 0.01),
            "wv": wgt(lk[4], (H, H)), "bv": nrm(lk[5], (1, H), 0.01),
            "ln2_g": jnp.ones((1, H), jnp.float32),
            "ln2_b": jnp.zeros((1, H), jnp.float32),
            "wu": wgt(lk[6], (H, F)), "bu": jnp.zeros((1, F), jnp.float32),
            "wvf": wgt(lk[7], (F, H)), "bvf": jnp.zeros((1, H), jnp.float32),
        })
    return params


# ----------------------------------- main -------------------------------------

if __name__ == "__main__":
    cfg = dict(
        vocab_size=16,
        vocab_dim=16,
        hidden_dim=32,
        n_layers=2,
        ffn_dim=64,
        n_heads=4,
        feature_type="relu",   # -> sample_rfs() returns None in the reference
        compute_type="ps",
    )
    B, T = 2, 16               # scale = 32/16 = 2 -> L = 8 hidden positions

    key = jax.random.PRNGKey(0)
    k_tok, k_par = jax.random.split(key)
    tokens = jax.random.randint(k_tok, (B, T), 0, cfg["vocab_size"], dtype=jnp.int32)
    params = init_params(k_par, cfg)

    logits = slim_performer_forward(tokens, params, cfg)
    logits = jax.block_until_ready(logits)

    L = T // (cfg["hidden_dim"] // cfg["vocab_dim"])
    assert logits.shape == (B, L, cfg["vocab_size"])
    assert bool(jnp.all(jnp.isfinite(logits)))
    print("KERNEL_OK")
</pallas_src>

<mosaic_0001>
module attributes {stable_mosaic.version = 11 : i64} {
  func.func @slim_layer_kernel(%arg0: i32, %arg1: i32, %arg2: memref<1x8x32xf32, #tpu.memory_space<vmem>>, %arg3: memref<1x32xf32, #tpu.memory_space<vmem>>, %arg4: memref<1x32xf32, #tpu.memory_space<vmem>>, %arg5: memref<32x32xbf16, #tpu.memory_space<vmem>>, %arg6: memref<1x32xf32, #tpu.memory_space<vmem>>, %arg7: memref<32x32xbf16, #tpu.memory_space<vmem>>, %arg8: memref<1x32xf32, #tpu.memory_space<vmem>>, %arg9: memref<32x32xbf16, #tpu.memory_space<vmem>>, %arg10: memref<1x32xf32, #tpu.memory_space<vmem>>, %arg11: memref<1x32xf32, #tpu.memory_space<vmem>>, %arg12: memref<1x32xf32, #tpu.memory_space<vmem>>, %arg13: memref<32x64xbf16, #tpu.memory_space<vmem>>, %arg14: memref<1x64xf32, #tpu.memory_space<vmem>>, %arg15: memref<64x32xbf16, #tpu.memory_space<vmem>>, %arg16: memref<1x32xf32, #tpu.memory_space<vmem>>, %arg17: memref<1x8x32xf32, #tpu.memory_space<vmem>>, %arg18: memref<4x8x9xf32, #tpu.memory_space<vmem>>, %arg19: memref<4x1x8xf32, #tpu.memory_space<vmem>>) attributes {dimension_semantics = [#tpu.dimension_semantics<parallel>, #tpu.dimension_semantics<arbitrary>], iteration_bounds = array<i64: 2, 1>, scalar_prefetch = 0 : i64, scratch_operands = 2 : i64, tpu.core_type = #tpu.core_type<tc>, window_params = [{transform_indices = @transform_0, window_bounds = array<i64: 1, 8, 32>}, {pipeline_mode = #tpu.pipeline_mode<synchronous>, transform_indices = @transform_1, window_bounds = array<i64: 1, 32>}, {pipeline_mode = #tpu.pipeline_mode<synchronous>, transform_indices = @transform_2, window_bounds = array<i64: 1, 32>}, {pipeline_mode = #tpu.pipeline_mode<synchronous>, transform_indices = @transform_3, window_bounds = array<i64: 32, 32>}, {pipeline_mode = #tpu.pipeline_mode<synchronous>, transform_indices = @transform_4, window_bounds = array<i64: 1, 32>}, {pipeline_mode = #tpu.pipeline_mode<synchronous>, transform_indices = @transform_5, window_bounds = array<i64: 32, 32>}, {pipeline_mode = #tpu.pipeline_mode<synchronous>, transform_indices = @transform_6, window_bounds = array<i64: 1, 32>}, {pipeline_mode = #tpu.pipeline_mode<synchronous>, transform_indices = @transform_7, window_bounds = array<i64: 32, 32>}, {pipeline_mode = #tpu.pipeline_mode<synchronous>, transform_indices = @transform_8, window_bounds = array<i64: 1, 32>}, {pipeline_mode = #tpu.pipeline_mode<synchronous>, transform_indices = @transform_9, window_bounds = array<i64: 1, 32>}, {pipeline_mode = #tpu.pipeline_mode<synchronous>, transform_indices = @transform_10, window_bounds = array<i64: 1, 32>}, {pipeline_mode = #tpu.pipeline_mode<synchronous>, transform_indices = @transform_11, window_bounds = array<i64: 32, 64>}, {pipeline_mode = #tpu.pipeline_mode<synchronous>, transform_indices = @transform_12, window_bounds = array<i64: 1, 64>}, {pipeline_mode = #tpu.pipeline_mode<synchronous>, transform_indices = @transform_13, window_bounds = array<i64: 64, 32>}, {pipeline_mode = #tpu.pipeline_mode<synchronous>, transform_indices = @transform_14, window_bounds = array<i64: 1, 32>}, {transform_indices = @transform_15, window_bounds = array<i64: 1, 8, 32>}]} {
    %c0_i32 = arith.constant 0 : i32
    %0 = arith.cmpi eq, %arg1, %c0_i32 : i32
    %1 = arith.extui %0 : i1 to i32
    %c0_i32_0 = arith.constant 0 : i32
    %2 = arith.cmpi ne, %1, %c0_i32_0 : i32
    scf.if %2 {
      %cst_93 = arith.constant 0.000000e+00 : f32
      %192 = vector.broadcast %cst_93 : f32 to vector<4x8x9xf32>
      %c0_94 = arith.constant 0 : index
      %c0_95 = arith.constant 0 : index
      %c0_96 = arith.constant 0 : index
      %193 = vector.load %arg18[%c0_94, %c0_95, %c0_96] : memref<4x8x9xf32, #tpu.memory_space<vmem>>, vector<4x8x9xf32>
      tpu.vector_store %arg18[%c0_94, %c0_95, %c0_96], %192 {strides = array<i32>} : memref<4x8x9xf32, #tpu.memory_space<vmem>>, vector<4x8x9xf32>,
      %cst_97 = arith.constant 0.000000e+00 : f32
      %194 = vector.broadcast %cst_97 : f32 to vector<4x1x8xf32>
      %c0_98 = arith.constant 0 : index
      %c0_99 = arith.constant 0 : index
      %c0_100 = arith.constant 0 : index
      %195 = vector.load %arg19[%c0_98, %c0_99, %c0_100] : memref<4x1x8xf32, #tpu.memory_space<vmem>>, vector<4x1x8xf32>
      tpu.vector_store %arg19[%c0_98, %c0_99, %c0_100], %194 {strides = array<i32>} : memref<4x1x8xf32, #tpu.memory_space<vmem>>, vector<4x1x8xf32>,
    } else {
    }
    %c0 = arith.constant 0 : index
    %c0_1 = arith.constant 0 : index
    %c0_2 = arith.constant 0 : index
    %3 = vector.load %arg2[%c0, %c0_1, %c0_2] : memref<1x8x32xf32, #tpu.memory_space<vmem>>, vector<1x8x32xf32>
    %4 = vector.shape_cast %3 : vector<1x8x32xf32> to vector<8x32xf32>
    %c0_3 = arith.constant 0 : index
    %c0_4 = arith.constant 0 : index
    %5 = vector.load %arg3[%c0_3, %c0_4] : memref<1x32xf32, #tpu.memory_space<vmem>>, vector<1x32xf32>
    %c0_5 = arith.constant 0 : index
    %c0_6 = arith.constant 0 : index
    %6 = vector.load %arg4[%c0_5, %c0_6] : memref<1x32xf32, #tpu.memory_space<vmem>>, vector<1x32xf32>
    %cst = arith.constant dense<0.000000e+00> : vector<8xf32>
    %7 = vector.multi_reduction <add>, %4, %cst [1] : vector<8x32xf32> to vector<8xf32>
    %8 = vector.shape_cast %7 : vector<8xf32> to vector<8x1xf32>
    %cst_7 = arith.constant 3.200000e+01 : f32
    %9 = vector.broadcast %cst_7 : f32 to vector<8x1xf32>
    %10 = arith.divf %8, %9 : vector<8x1xf32>
    %11 = vector.broadcast %10 : vector<8x1xf32> to vector<8x32xf32>
    %12 = arith.subf %4, %11 : vector<8x32xf32>
    %13 = arith.mulf %12, %12 : vector<8x32xf32>
    %cst_8 = arith.constant dense<0.000000e+00> : vector<8xf32>
    %14 = vector.multi_reduction <add>, %13, %cst_8 [1] : vector<8x32xf32> to vector<8xf32>
    %15 = vector.shape_cast %14 : vector<8xf32> to vector<8x1xf32>
    %cst_9 = arith.constant 3.200000e+01 : f32
    %16 = vector.broadcast %cst_9 : f32 to vector<8x1xf32>
    %17 = arith.divf %15, %16 : vector<8x1xf32>
    %18 = vector.broadcast %10 : vector<8x1xf32> to vector<8x32xf32>
    %19 = arith.subf %4, %18 : vector<8x32xf32>
    %cst_10 = arith.constant 9.99999974E-6 : f32
    %20 = vector.broadcast %cst_10 : f32 to vector<8x1xf32>
    %21 = arith.addf %17, %20 : vector<8x1xf32>
    %22 = math.rsqrt %21 : vector<8x1xf32>
    %23 = vector.broadcast %22 : vector<8x1xf32> to vector<8x32xf32>
    %24 = arith.mulf %19, %23 : vector<8x32xf32>
    %25 = vector.broadcast %5 : vector<1x32xf32> to vector<8x32xf32>
    %26 = arith.mulf %24, %25 : vector<8x32xf32>
    %27 = vector.broadcast %6 : vector<1x32xf32> to vector<8x32xf32>
    %28 = arith.addf %26, %27 : vector<8x32xf32>
    %29 = arith.truncf %28 : vector<8x32xf32> to vector<8x32xbf16>
    %c0_11 = arith.constant 0 : index
    %c0_12 = arith.constant 0 : index
    %30 = vector.load %arg5[%c0_11, %c0_12] : memref<32x32xbf16, #tpu.memory_space<vmem>>, vector<32x32xbf16>
    %cst_13 = arith.constant dense<0.000000e+00> : vector<8x32xf32>
    %31 = tpu.matmul %29, %30, %cst_13 {dimension_numbers = #tpu.dot_dimension_numbers<[1], [0], [0], [1], [0, 0, 1, 1], [], []>} : vector<8x32xbf16>, vector<32x32xbf16>, vector<8x32xf32> -> vector<8x32xf32>
    %c0_14 = arith.constant 0 : index
    %c0_15 = arith.constant 0 : index
    %32 = vector.load %arg6[%c0_14, %c0_15] : memref<1x32xf32, #tpu.memory_space<vmem>>, vector<1x32xf32>
    %33 = vector.broadcast %32 : vector<1x32xf32> to vector<8x32xf32>
    %34 = arith.addf %31, %33 : vector<8x32xf32>
    %cst_16 = arith.constant 0.000000e+00 : f32
    %35 = vector.broadcast %cst_16 : f32 to vector<8x32xf32>
    %36 = arith.maximumf %34, %35 : vector<8x32xf32>
    %c0_17 = arith.constant 0 : index
    %c0_18 = arith.constant 0 : index
    %37 = vector.load %arg7[%c0_17, %c0_18] : memref<32x32xbf16, #tpu.memory_space<vmem>>, vector<32x32xbf16>
    %cst_19 = arith.constant dense<0.000000e+00> : vector<8x32xf32>
    %38 = tpu.matmul %29, %37, %cst_19 {dimension_numbers = #tpu.dot_dimension_numbers<[1], [0], [0], [1], [0, 0, 1, 1], [], []>} : vector<8x32xbf16>, vector<32x32xbf16>, vector<8x32xf32> -> vector<8x32xf32>
    %c0_20 = arith.constant 0 : index
    %c0_21 = arith.constant 0 : index
    %39 = vector.load %arg8[%c0_20, %c0_21] : memref<1x32xf32, #tpu.memory_space<vmem>>, vector<1x32xf32>
    %40 = vector.broadcast %39 : vector<1x32xf32> to vector<8x32xf32>
    %41 = arith.addf %38, %40 : vector<8x32xf32>
    %cst_22 = arith.constant 0.000000e+00 : f32
    %42 = vector.broadcast %cst_22 : f32 to vector<8x32xf32>
    %43 = arith.maximumf %41, %42 : vector<8x32xf32>
    %c0_23 = arith.constant 0 : index
    %c0_24 = arith.constant 0 : index
    %44 = vector.load %arg9[%c0_23, %c0_24] : memref<32x32xbf16, #tpu.memory_space<vmem>>, vector<32x32xbf16>
    %cst_25 = arith.constant dense<0.000000e+00> : vector<8x32xf32>
    %45 = tpu.matmul %29, %44, %cst_25 {dimension_numbers = #tpu.dot_dimension_numbers<[1], [0], [0], [1], [0, 0, 1, 1], [], []>} : vector<8x32xbf16>, vector<32x32xbf16>, vector<8x32xf32> -> vector<8x32xf32>
    %c0_26 = arith.constant 0 : index
    %c0_27 = arith.constant 0 : index
    %46 = vector.load %arg10[%c0_26, %c0_27] : memref<1x32xf32, #tpu.memory_space<vmem>>, vector<1x32xf32>
    %47 = vector.broadcast %46 : vector<1x32xf32> to vector<8x32xf32>
    %48 = arith.addf %45, %47 : vector<8x32xf32>
    %49 = vector.shape_cast %36 : vector<8x32xf32> to vector<8x4x8xf32>
    %50 = tpu.transpose %49, [1, 0, 2] : vector<8x4x8xf32> -> vector<4x8x8xf32>
    %51 = arith.truncf %50 : vector<4x8x8xf32> to vector<4x8x8xbf16>
    %52 = vector.shape_cast %43 : vector<8x32xf32> to vector<8x4x8xf32>
    %53 = tpu.transpose %52, [1, 0, 2] : vector<8x4x8xf32> -> vector<4x8x8xf32>
    %54 = arith.truncf %53 : vector<4x8x8xf32> to vector<4x8x8xbf16>
    %55 = vector.shape_cast %48 : vector<8x32xf32> to vector<8x4x8xf32>
    %56 = tpu.transpose %55, [1, 0, 2] : vector<8x4x8xf32> -> vector<4x8x8xf32>
    %57 = arith.truncf %56 : vector<4x8x8xf32> to vector<4x8x8xbf16>
    %58 = tpu.iota {dimensions = array<i32: 0>} : vector<8x8xi32>
    %59 = tpu.iota {dimensions = array<i32: 1>} : vector<8x8xi32>
    "tpu.trace_start"() <{level = 10 : i32, message = "hqm,hkm->hqk"}> : () -> ()
    %cst_28 = arith.constant dense<0.000000e+00> : vector<4x8x8xf32>
    %60 = tpu.matmul %51, %54, %cst_28 {dimension_numbers = #tpu.dot_dimension_numbers<[2], [2], [1], [1], [0, 0, 0, 1, 1, 1], [0], [0]>} : vector<4x8x8xbf16>, vector<4x8x8xbf16>, vector<4x8x8xf32> -> vector<4x8x8xf32>
    "tpu.trace_stop"() : () -> ()
    %61 = arith.cmpi sle, %59, %58 : vector<8x8xi32>
    %62 = vector.shape_cast %61 : vector<8x8xi1> to vector<1x8x8xi1>
    %cst_29 = arith.constant 0.000000e+00 : f32
    %63 = vector.shape_cast %62 : vector<1x8x8xi1> to vector<1x8x8xi1>
    %64 = vector.broadcast %63 : vector<1x8x8xi1> to vector<4x8x8xi1>
    %65 = vector.broadcast %cst_29 : f32 to vector<4x8x8xf32>
    %66 = arith.select %64, %60, %65 : vector<4x8x8xi1>, vector<4x8x8xf32>
    %67 = arith.truncf %66 : vector<4x8x8xf32> to vector<4x8x8xbf16>
    %c0_30 = arith.constant 0 : index
    %c0_31 = arith.constant 0 : index
    %c0_32 = arith.constant 0 : index
    %68 = vector.load %arg18[%c0_30, %c0_31, %c0_32] : memref<4x8x9xf32, #tpu.memory_space<vmem>>, vector<4x8x9xf32>
    %69 = arith.truncf %68 : vector<4x8x9xf32> to vector<4x8x9xbf16>
    %cst_33 = arith.constant 1.000000e+00 : bf16
    %70 = vector.broadcast %cst_33 : bf16 to vector<4x8x1xbf16>
    %71 = tpu.concatenate %57, %70 in 2 : vector<4x8x8xbf16>, vector<4x8x1xbf16> -> vector<4x8x9xbf16>
    "tpu.trace_start"() <{level = 10 : i32, message = "hqm,hmn->hqn"}> : () -> ()
    %cst_34 = arith.constant dense<0.000000e+00> : vector<4x8x9xf32>
    %72 = tpu.matmul %51, %69, %cst_34 {dimension_numbers = #tpu.dot_dimension_numbers<[2], [1], [1], [2], [0, 0, 0, 1, 1, 2], [0], [0]>} : vector<4x8x8xbf16>, vector<4x8x9xbf16>, vector<4x8x9xf32> -> vector<4x8x9xf32>
    "tpu.trace_stop"() : () -> ()
    "tpu.trace_start"() <{level = 10 : i32, message = "hqk,hkn->hqn"}> : () -> ()
    %cst_35 = arith.constant dense<0.000000e+00> : vector<4x8x9xf32>
    %73 = tpu.matmul %67, %71, %cst_35 {dimension_numbers = #tpu.dot_dimension_numbers<[2], [1], [1], [2], [0, 0, 0, 1, 1, 2], [0], [0]>} : vector<4x8x8xbf16>, vector<4x8x9xbf16>, vector<4x8x9xf32> -> vector<4x8x9xf32>
    "tpu.trace_stop"() : () -> ()
    %74 = arith.addf %72, %73 : vector<4x8x9xf32>
    %75 = vector.extract_strided_slice %74 {offsets = [0, 0, 0], sizes = [4, 8, 8], strides = [1, 1, 1]} : vector<4x8x9xf32> to vector<4x8x8xf32>
    %76 = vector.extract_strided_slice %74 {offsets = [0, 0, 8], sizes = [4, 8, 1], strides = [1, 1, 1]} : vector<4x8x9xf32> to vector<4x8x1xf32>
    %c0_36 = arith.constant 0 : index
    %c0_37 = arith.constant 0 : index
    %c0_38 = arith.constant 0 : index
    %77 = vector.load %arg18[%c0_36, %c0_37, %c0_38] : memref<4x8x9xf32, #tpu.memory_space<vmem>>, vector<4x8x9xf32>
    "tpu.trace_start"() <{level = 10 : i32, message = "hkm,hkn->hmn"}> : () -> ()
    %cst_39 = arith.constant dense<0.000000e+00> : vector<4x8x9xf32>
    %78 = tpu.matmul %54, %71, %cst_39 {dimension_numbers = #tpu.dot_dimension_numbers<[1], [1], [2], [2], [0, 0, 0, 2, 1, 2], [0], [0]>} : vector<4x8x8xbf16>, vector<4x8x9xbf16>, vector<4x8x9xf32> -> vector<4x8x9xf32>
    "tpu.trace_stop"() : () -> ()
    %79 = arith.addf %77, %78 : vector<4x8x9xf32>
    %c0_40 = arith.constant 0 : index
    %c0_41 = arith.constant 0 : index
    %c0_42 = arith.constant 0 : index
    %80 = vector.load %arg18[%c0_40, %c0_41, %c0_42] : memref<4x8x9xf32, #tpu.memory_space<vmem>>, vector<4x8x9xf32>
    tpu.vector_store %arg18[%c0_40, %c0_41, %c0_42], %79 {strides = array<i32>} : memref<4x8x9xf32, #tpu.memory_space<vmem>>, vector<4x8x9xf32>,
    %cst_43 = arith.constant 1.000000e-16 : f32
    %81 = vector.broadcast %cst_43 : f32 to vector<4x8x1xf32>
    %82 = arith.addf %76, %81 : vector<4x8x1xf32>
    %83 = tpu.reciprocal %82 {approx = true} : vector<4x8x1xf32> -> vector<4x8x1xf32>
    %84 = vector.broadcast %83 : vector<4x8x1xf32> to vector<4x8x8xf32>
    %85 = arith.mulf %75, %84 : vector<4x8x8xf32>
    %86 = tpu.transpose %85, [1, 0, 2] : vector<4x8x8xf32> -> vector<8x4x8xf32>
    %87 = vector.shape_cast %86 : vector<8x4x8xf32> to vector<8x32xf32>
    %88 = arith.addf %4, %87 : vector<8x32xf32>
    %c0_44 = arith.constant 0 : index
    %c0_45 = arith.constant 0 : index
    %89 = vector.load %arg11[%c0_44, %c0_45] : memref<1x32xf32, #tpu.memory_space<vmem>>, vector<1x32xf32>
    %c0_46 = arith.constant 0 : index
    %c0_47 = arith.constant 0 : index
    %90 = vector.load %arg12[%c0_46, %c0_47] : memref<1x32xf32, #tpu.memory_space<vmem>>, vector<1x32xf32>
    %cst_48 = arith.constant dense<0.000000e+00> : vector<8xf32>
    %91 = vector.multi_reduction <add>, %88, %cst_48 [1] : vector<8x32xf32> to vector<8xf32>
    %92 = vector.shape_cast %91 : vector<8xf32> to vector<8x1xf32>
    %cst_49 = arith.constant 3.200000e+01 : f32
    %93 = vector.broadcast %cst_49 : f32 to vector<8x1xf32>
    %94 = arith.divf %92, %93 : vector<8x1xf32>
    %95 = vector.broadcast %94 : vector<8x1xf32> to vector<8x32xf32>
    %96 = arith.subf %88, %95 : vector<8x32xf32>
    %97 = arith.mulf %96, %96 : vector<8x32xf32>
    %cst_50 = arith.constant dense<0.000000e+00> : vector<8xf32>
    %98 = vector.multi_reduction <add>, %97, %cst_50 [1] : vector<8x32xf32> to vector<8xf32>
    %99 = vector.shape_cast %98 : vector<8xf32> to vector<8x1xf32>
    %cst_51 = arith.constant 3.200000e+01 : f32
    %100 = vector.broadcast %cst_51 : f32 to vector<8x1xf32>
    %101 = arith.divf %99, %100 : vector<8x1xf32>
    %102 = vector.broadcast %94 : vector<8x1xf32> to vector<8x32xf32>
    %103 = arith.subf %88, %102 : vector<8x32xf32>
    %cst_52 = arith.constant 9.99999974E-6 : f32
    %104 = vector.broadcast %cst_52 : f32 to vector<8x1xf32>
    %105 = arith.addf %101, %104 : vector<8x1xf32>
    %106 = math.rsqrt %105 : vector<8x1xf32>
    %107 = vector.broadcast %106 : vector<8x1xf32> to vector<8x32xf32>
    %108 = arith.mulf %103, %107 : vector<8x32xf32>
    %109 = vector.broadcast %89 : vector<1x32xf32> to vector<8x32xf32>
    %110 = arith.mulf %108, %109 : vector<8x32xf32>
    %111 = vector.broadcast %90 : vector<1x32xf32> to vector<8x32xf32>
    %112 = arith.addf %110, %111 : vector<8x32xf32>
    %113 = arith.truncf %112 : vector<8x32xf32> to vector<8x32xbf16>
    %c0_53 = arith.constant 0 : index
    %c0_54 = arith.constant 0 : index
    %114 = vector.load %arg13[%c0_53, %c0_54] : memref<32x64xbf16, #tpu.memory_space<vmem>>, vector<32x64xbf16>
    %cst_55 = arith.constant dense<0.000000e+00> : vector<8x64xf32>
    %115 = tpu.matmul %113, %114, %cst_55 {dimension_numbers = #tpu.dot_dimension_numbers<[1], [0], [0], [1], [0, 0, 1, 1], [], []>} : vector<8x32xbf16>, vector<32x64xbf16>, vector<8x64xf32> -> vector<8x64xf32>
    %c0_56 = arith.constant 0 : index
    %c0_57 = arith.constant 0 : index
    %116 = vector.load %arg14[%c0_56, %c0_57] : memref<1x64xf32, #tpu.memory_space<vmem>>, vector<1x64xf32>
    %117 = vector.broadcast %116 : vector<1x64xf32> to vector<8x64xf32>
    %118 = arith.addf %115, %117 : vector<8x64xf32>
    %cst_58 = arith.constant 5.000000e-01 : f32
    %119 = vector.broadcast %cst_58 : f32 to vector<8x64xf32>
    %120 = arith.mulf %119, %118 : vector<8x64xf32>
    %121 = arith.mulf %118, %118 : vector<8x64xf32>
    %122 = arith.mulf %121, %118 : vector<8x64xf32>
    %cst_59 = arith.constant 4.471500e-02 : f32
    %123 = vector.broadcast %cst_59 : f32 to vector<8x64xf32>
    %124 = arith.mulf %123, %122 : vector<8x64xf32>
    %125 = arith.addf %118, %124 : vector<8x64xf32>
    %cst_60 = arith.constant 0.797884583 : f32
    %126 = vector.broadcast %cst_60 : f32 to vector<8x64xf32>
    %127 = arith.mulf %126, %125 : vector<8x64xf32>
    %128 = math.tanh %127 : vector<8x64xf32>
    %cst_61 = arith.constant 1.000000e+00 : f32
    %129 = vector.broadcast %cst_61 : f32 to vector<8x64xf32>
    %130 = arith.addf %129, %128 : vector<8x64xf32>
    %131 = arith.mulf %120, %130 : vector<8x64xf32>
    %132 = arith.truncf %131 : vector<8x64xf32> to vector<8x64xbf16>
    %c0_62 = arith.constant 0 : index
    %c0_63 = arith.constant 0 : index
    %133 = vector.load %arg15[%c0_62, %c0_63] : memref<64x32xbf16, #tpu.memory_space<vmem>>, vector<64x32xbf16>
    %cst_64 = arith.constant dense<0.000000e+00> : vector<8x32xf32>
    %134 = tpu.matmul %132, %133, %cst_64 {dimension_numbers = #tpu.dot_dimension_numbers<[1], [0], [0], [1], [0, 0, 1, 1], [], []>} : vector<8x64xbf16>, vector<64x32xbf16>, vector<8x32xf32> -> vector<8x32xf32>
    %135 = arith.addf %88, %134 : vector<8x32xf32>
    %c0_65 = arith.constant 0 : index
    %c0_66 = arith.constant 0 : index
    %136 = vector.load %arg16[%c0_65, %c0_66] : memref<1x32xf32, #tpu.memory_space<vmem>>, vector<1x32xf32>
    %137 = vector.broadcast %136 : vector<1x32xf32> to vector<8x32xf32>
    %138 = arith.addf %135, %137 : vector<8x32xf32>
    %c0_67 = arith.constant 0 : index
    %c0_68 = arith.constant 0 : index
    %139 = vector.load %arg11[%c0_67, %c0_68] : memref<1x32xf32, #tpu.memory_space<vmem>>, vector<1x32xf32>
    %c0_69 = arith.constant 0 : index
    %c0_70 = arith.constant 0 : index
    %140 = vector.load %arg12[%c0_69, %c0_70] : memref<1x32xf32, #tpu.memory_space<vmem>>, vector<1x32xf32>
    %cst_71 = arith.constant dense<0.000000e+00> : vector<8xf32>
    %141 = vector.multi_reduction <add>, %138, %cst_71 [1] : vector<8x32xf32> to vector<8xf32>
    %142 = vector.shape_cast %141 : vector<8xf32> to vector<8x1xf32>
    %cst_72 = arith.constant 3.200000e+01 : f32
    %143 = vector.broadcast %cst_72 : f32 to vector<8x1xf32>
    %144 = arith.divf %142, %143 : vector<8x1xf32>
    %145 = vector.broadcast %144 : vector<8x1xf32> to vector<8x32xf32>
    %146 = arith.subf %138, %145 : vector<8x32xf32>
    %147 = arith.mulf %146, %146 : vector<8x32xf32>
    %cst_73 = arith.constant dense<0.000000e+00> : vector<8xf32>
    %148 = vector.multi_reduction <add>, %147, %cst_73 [1] : vector<8x32xf32> to vector<8xf32>
    %149 = vector.shape_cast %148 : vector<8xf32> to vector<8x1xf32>
    %cst_74 = arith.constant 3.200000e+01 : f32
    %150 = vector.broadcast %cst_74 : f32 to vector<8x1xf32>
    %151 = arith.divf %149, %150 : vector<8x1xf32>
    %152 = vector.broadcast %144 : vector<8x1xf32> to vector<8x32xf32>
    %153 = arith.subf %138, %152 : vector<8x32xf32>
    %cst_75 = arith.constant 9.99999974E-6 : f32
    %154 = vector.broadcast %cst_75 : f32 to vector<8x1xf32>
    %155 = arith.addf %151, %154 : vector<8x1xf32>
    %156 = math.rsqrt %155 : vector<8x1xf32>
    %157 = vector.broadcast %156 : vector<8x1xf32> to vector<8x32xf32>
    %158 = arith.mulf %153, %157 : vector<8x32xf32>
    %159 = vector.broadcast %139 : vector<1x32xf32> to vector<8x32xf32>
    %160 = arith.mulf %158, %159 : vector<8x32xf32>
    %161 = vector.broadcast %140 : vector<1x32xf32> to vector<8x32xf32>
    %162 = arith.addf %160, %161 : vector<8x32xf32>
    %163 = arith.truncf %162 : vector<8x32xf32> to vector<8x32xbf16>
    %c0_76 = arith.constant 0 : index
    %c0_77 = arith.constant 0 : index
    %164 = vector.load %arg13[%c0_76, %c0_77] : memref<32x64xbf16, #tpu.memory_space<vmem>>, vector<32x64xbf16>
    %cst_78 = arith.constant dense<0.000000e+00> : vector<8x64xf32>
    %165 = tpu.matmul %163, %164, %cst_78 {dimension_numbers = #tpu.dot_dimension_numbers<[1], [0], [0], [1], [0, 0, 1, 1], [], []>} : vector<8x32xbf16>, vector<32x64xbf16>, vector<8x64xf32> -> vector<8x64xf32>
    %c0_79 = arith.constant 0 : index
    %c0_80 = arith.constant 0 : index
    %166 = vector.load %arg14[%c0_79, %c0_80] : memref<1x64xf32, #tpu.memory_space<vmem>>, vector<1x64xf32>
    %167 = vector.broadcast %166 : vector<1x64xf32> to vector<8x64xf32>
    %168 = arith.addf %165, %167 : vector<8x64xf32>
    %cst_81 = arith.constant 5.000000e-01 : f32
    %169 = vector.broadcast %cst_81 : f32 to vector<8x64xf32>
    %170 = arith.mulf %169, %168 : vector<8x64xf32>
    %171 = arith.mulf %168, %168 : vector<8x64xf32>
    %172 = arith.mulf %171, %168 : vector<8x64xf32>
    %cst_82 = arith.constant 4.471500e-02 : f32
    %173 = vector.broadcast %cst_82 : f32 to vector<8x64xf32>
    %174 = arith.mulf %173, %172 : vector<8x64xf32>
    %175 = arith.addf %168, %174 : vector<8x64xf32>
    %cst_83 = arith.constant 0.797884583 : f32
    %176 = vector.broadcast %cst_83 : f32 to vector<8x64xf32>
    %177 = arith.mulf %176, %175 : vector<8x64xf32>
    %178 = math.tanh %177 : vector<8x64xf32>
    %cst_84 = arith.constant 1.000000e+00 : f32
    %179 = vector.broadcast %cst_84 : f32 to vector<8x64xf32>
    %180 = arith.addf %179, %178 : vector<8x64xf32>
    %181 = arith.mulf %170, %180 : vector<8x64xf32>
    %182 = arith.truncf %181 : vector<8x64xf32> to vector<8x64xbf16>
    %c0_85 = arith.constant 0 : index
    %c0_86 = arith.constant 0 : index
    %183 = vector.load %arg15[%c0_85, %c0_86] : memref<64x32xbf16, #tpu.memory_space<vmem>>, vector<64x32xbf16>
    %cst_87 = arith.constant dense<0.000000e+00> : vector<8x32xf32>
    %184 = tpu.matmul %182, %183, %cst_87 {dimension_numbers = #tpu.dot_dimension_numbers<[1], [0], [0], [1], [0, 0, 1, 1], [], []>} : vector<8x64xbf16>, vector<64x32xbf16>, vector<8x32xf32> -> vector<8x32xf32>
    %185 = arith.addf %138, %184 : vector<8x32xf32>
    %c0_88 = arith.constant 0 : index
    %c0_89 = arith.constant 0 : index
    %186 = vector.load %arg16[%c0_88, %c0_89] : memref<1x32xf32, #tpu.memory_space<vmem>>, vector<1x32xf32>
    %187 = vector.broadcast %186 : vector<1x32xf32> to vector<8x32xf32>
    %188 = arith.addf %185, %187 : vector<8x32xf32>
    %c0_90 = arith.constant 0 : index
    %c0_91 = arith.constant 0 : index
    %c0_92 = arith.constant 0 : index
    %189 = vector.load %arg17[%c0_90, %c0_91, %c0_92] : memref<1x8x32xf32, #tpu.memory_space<vmem>>, vector<1x8x32xf32>
    %190 = vector.shape_cast %189 : vector<1x8x32xf32> to vector<8x32xf32>
    %191 = vector.shape_cast %188 : vector<8x32xf32> to vector<1x8x32xf32>
    tpu.vector_store %arg17[%c0_90, %c0_91, %c0_92], %191 {strides = array<i32>} : memref<1x8x32xf32, #tpu.memory_space<vmem>>, vector<1x8x32xf32>,
    return
  }
  func.func @transform_0(%arg0: i32, %arg1: i32) -> (i32, i32, i32) {
    %c0_i32 = arith.constant 0 : i32
    %c0_i32_0 = arith.constant 0 : i32
    return %arg0, %arg1, %c0_i32 : i32, i32, i32
  }
  func.func @transform_1(%arg0: i32, %arg1: i32) -> (i32, i32) {
    %c0_i32 = arith.constant 0 : i32
    %c0_i32_0 = arith.constant 0 : i32
    %c0_i32_1 = arith.constant 0 : i32
    return %c0_i32, %c0_i32_0 : i32, i32
  }
  func.func @transform_2(%arg0: i32, %arg1: i32) -> (i32, i32) {
    %c0_i32 = arith.constant 0 : i32
    %c0_i32_0 = arith.constant 0 : i32
    %c0_i32_1 = arith.constant 0 : i32
    return %c0_i32, %c0_i32_0 : i32, i32
  }
  func.func @transform_3(%arg0: i32, %arg1: i32) -> (i32, i32) {
    %c0_i32 = arith.constant 0 : i32
    %c0_i32_0 = arith.constant 0 : i32
    %c0_i32_1 = arith.constant 0 : i32
    return %c0_i32, %c0_i32_0 : i32, i32
  }
  func.func @transform_4(%arg0: i32, %arg1: i32) -> (i32, i32) {
    %c0_i32 = arith.constant 0 : i32
    %c0_i32_0 = arith.constant 0 : i32
    %c0_i32_1 = arith.constant 0 : i32
    return %c0_i32, %c0_i32_0 : i32, i32
  }
  func.func @transform_5(%arg0: i32, %arg1: i32) -> (i32, i32) {
    %c0_i32 = arith.constant 0 : i32
    %c0_i32_0 = arith.constant 0 : i32
    %c0_i32_1 = arith.constant 0 : i32
    return %c0_i32, %c0_i32_0 : i32, i32
  }
  func.func @transform_6(%arg0: i32, %arg1: i32) -> (i32, i32) {
    %c0_i32 = arith.constant 0 : i32
    %c0_i32_0 = arith.constant 0 : i32
    %c0_i32_1 = arith.constant 0 : i32
    return %c0_i32, %c0_i32_0 : i32, i32
  }
  func.func @transform_7(%arg0: i32, %arg1: i32) -> (i32, i32) {
    %c0_i32 = arith.constant 0 : i32
    %c0_i32_0 = arith.constant 0 : i32
    %c0_i32_1 = arith.constant 0 : i32
    return %c0_i32, %c0_i32_0 : i32, i32
  }
  func.func @transform_8(%arg0: i32, %arg1: i32) -> (i32, i32) {
    %c0_i32 = arith.constant 0 : i32
    %c0_i32_0 = arith.constant 0 : i32
    %c0_i32_1 = arith.constant 0 : i32
    return %c0_i32, %c0_i32_0 : i32, i32
  }
  func.func @transform_9(%arg0: i32, %arg1: i32) -> (i32, i32) {
    %c0_i32 = arith.constant 0 : i32
    %c0_i32_0 = arith.constant 0 : i32
    %c0_i32_1 = arith.constant 0 : i32
    return %c0_i32, %c0_i32_0 : i32, i32
  }
  func.func @transform_10(%arg0: i32, %arg1: i32) -> (i32, i32) {
    %c0_i32 = arith.constant 0 : i32
    %c0_i32_0 = arith.constant 0 : i32
    %c0_i32_1 = arith.constant 0 : i32
    return %c0_i32, %c0_i32_0 : i32, i32
  }
  func.func @transform_11(%arg0: i32, %arg1: i32) -> (i32, i32) {
    %c0_i32 = arith.constant 0 : i32
    %c0_i32_0 = arith.constant 0 : i32
    %c0_i32_1 = arith.constant 0 : i32
    return %c0_i32, %c0_i32_0 : i32, i32
  }
  func.func @transform_12(%arg0: i32, %arg1: i32) -> (i32, i32) {
    %c0_i32 = arith.constant 0 : i32
    %c0_i32_0 = arith.constant 0 : i32
    %c0_i32_1 = arith.constant 0 : i32
    return %c0_i32, %c0_i32_0 : i32, i32
  }
  func.func @transform_13(%arg0: i32, %arg1: i32) -> (i32, i32) {
    %c0_i32 = arith.constant 0 : i32
    %c0_i32_0 = arith.constant 0 : i32
    %c0_i32_1 = arith.constant 0 : i32
    return %c0_i32, %c0_i32_0 : i32, i32
  }
  func.func @transform_14(%arg0: i32, %arg1: i32) -> (i32, i32) {
    %c0_i32 = arith.constant 0 : i32
    %c0_i32_0 = arith.constant 0 : i32
    %c0_i32_1 = arith.constant 0 : i32
    return %c0_i32, %c0_i32_0 : i32, i32
  }
  func.func @transform_15(%arg0: i32, %arg1: i32) -> (i32, i32, i32) {
    %c0_i32 = arith.constant 0 : i32
    %c0_i32_0 = arith.constant 0 : i32
    return %arg0, %arg1, %c0_i32 : i32, i32, i32
  }
}

</mosaic_0001>

<bundles_post_ra>
// kernel: tpu_custom_call.1
= control target key start
LH: loop header
LB: loop body
LE: loop exit
PB: predicated region body
PF: predicated region fallthrough
CT: control target
= control target key end

     0   :  { %s3016_s0 = inlined_call_operand.vmem [shape: f32[2,8,32], index: 0, kind: input, shape index: {}]   ;;  %s3017_s1 = inlined_call_operand.hbm [shape: f32[1,32], index: 1, kind: input, shape index: {}]   ;;  %s3018_s2 = inlined_call_operand.vmem [shape: f32[1,32], index: 2, kind: input, shape index: {}]   ;;  %s3019_s3 = inlined_call_operand.vmem [shape: bf16[32,32], index: 3, kind: input, shape index: {}]   ;;  %s3020_s4 = inlined_call_operand.vmem [shape: f32[1,32], index: 4, kind: input, shape index: {}]   ;;  %s3021_s5 = inlined_call_operand.vmem [shape: bf16[32,32], index: 5, kind: input, shape index: {}]   ;;  %s3022_s6 = inlined_call_operand.vmem [shape: f32[1,32], index: 6, kind: input, shape index: {}]   ;;  %s3023_s7 = inlined_call_operand.hbm [shape: bf16[32,32], index: 7, kind: input, shape index: {}]   ;;  %s3024_s8 = inlined_call_operand.vmem [shape: f32[1,32], index: 8, kind: input, shape index: {}]   ;;  %s3025_s9 = inlined_call_operand.vmem [shape: f32[1,32], index: 9, kind: input, shape index: {}]   ;;  %s3026_s10 = inlined_call_operand.vmem [shape: f32[1,32], index: 10, kind: input, shape index: {}]   ;;  %s3027_s11 = inlined_call_operand.hbm [shape: bf16[32,64], index: 11, kind: input, shape index: {}]   ;;  %s3028_s12 = inlined_call_operand.vmem [shape: f32[1,64], index: 12, kind: input, shape index: {}]   ;;  %s3029_s13 = inlined_call_operand.vmem [shape: bf16[64,32], index: 13, kind: input, shape index: {}]   ;;  %s3030_s14 = inlined_call_operand.vmem [shape: f32[1,32], index: 14, kind: input, shape index: {}]   ;;  %s3031_s15 = inlined_call_operand.hbm [shape: f32[2,8,32], index: 15, kind: output, shape index: {}]  }
   0x1   :  { %3043 = sst [smem:[#allocation23_spill]] %s3023_s7 }
   0x2   :  { %3044 = sst [smem:[#allocation24_spill]] %s3030_s14 }
   0x3   :  { %3045 = sst [smem:[#allocation25_spill]] %s3031_s15 }
   0x4   :  { %20 = vsyncpa [#allocation5], 0 }
   0x5   :  { %21 = vsyncpa [#allocation8], 0 }
   0x6   :  { %22 = vsyncpa [#allocation6], 0 }
   0x7   :  { %24 = vsyncpa [#allocation6 + $0x1], 0  ;;  %s2475_s18 = smov 0   ;;  %s2477_s19 = smov 0  }
   0x8   :  { %s2479_s20 = smov 0   ;;  %s2481_s21 = smov 0  }
   0x9   :  { %s2483_s22 = smov 0   ;;  %s2485_s23 = smov 0  }
   0xa LB: > { %3046 = sst [smem:[#allocation14_spill]] %s2357_s18  ;;  %s1968_s24 = sadd.s32 4294967295, %s2377_s23   ;;  %s2377_s23 = sphi %s2485_s23, %s30_s23   ;;  %s2373_s22 = sphi %s2483_s22, %s3073_s22   ;;  %s2369_s21 = sphi %s2481_s21, %s3072_s21   ;;  %s2365_s20 = sphi %s2479_s20, %s3071_s20   ;;  %s2361_s19 = sphi %s2477_s19, %s3070_s19   ;;  %s2357_s18 = sphi %s2475_s18, %s3069_s18  }
   0xb   : > { %3047 = sst [smem:[#allocation15_spill]] %s2361_s19  ;;  %s1969_s25 = sadd.s32 4294967294, %s2377_s23  }
   0xc   : > { %3048 = sst [smem:[#allocation16_spill]] %s2365_s20  ;;  %s42_s26 = sadd.s32 1, %s2373_s22 }
   0xd   : > { %3049 = sst [smem:[#allocation17_spill]] %s2373_s22  ;;  %s373_s27 = sadd.s32 1, %s2365_s20 }
   0xe   : > { %3050 = sst [smem:[#allocation18_spill]] %s2377_s23  ;;  %p44_p0 = scmp.ge.s32.totalorder %s42_s26, 2 }
   0xf   : > { %p383_p1 = scmp.ne.s32.totalorder %s2365_s20, %s2361_s19  ;;  %p384_p2 = scmp.eq.s32.totalorder %s1968_s24, 1 }
  0x10   : > { %p389_p3 = scmp.ne.s32.totalorder %s2361_s19, %s2357_s18  ;;  %s3075_s26 = smov (%p44_p0, %s42_s26), 0 }
  0x11   : > { %3051 = sst [smem:[#allocation19_spill]] %s3075_s26  ;;  %p2515_p4 = por %p384_p2, %p383_p1 }
  0x12   : > { %p390_p5 = scmp.eq.s32.totalorder %s1969_s25, 1  ;;  %s368_s29 = ssub.s32 %s2373_s22, %s3075_s26 }
  0x13   : > { %s3052_s28 = scalar_select %p2515_p4, 1, 0 }
  0x14   : > { %p1970_p6 = scmp.ge.s32.totalorder %s2377_s23, 1  ;;  %p371_p7 = scmp.eq.s32.totalorder %s368_s29, 0 }
  0x15   : > { %3053 = sst [smem:[#allocation20_spill]] %s3052_s28  ;;  %p2522_p8 = por %p390_p5, %p389_p3 }
  0x16   : > { %p397_p9 = scmp.lt.s32.totalorder %s2377_s23, 3  ;;  %p2534_p11 = scmp.eq.s32.totalorder %s1968_s24, 0 }
  0x17   : > { %s3054_s30 = scalar_select %p2522_p8, 1, 0 }
  0x18   : > { %s2528_s16 = scalar_select %p371_p7, %s2365_s20, %s373_s27  }
  0x19   : > { %3055 = sst [smem:[#allocation21_spill]] %s3054_s30  ;;  %p2530_p10 = pnand %p1970_p6, %p397_p9 }
  0x1a   : > { %3056 = sst [smem:[#allocation22_spill]] %s2528_s16  ;;  %s2379_s22 = smov [#allocation7]  }
  0x1b   : > { %s3059_s7 = sld [smem:[#allocation23_spill]]  ;;  %p2082_p12 = pneg %p2530_p10 }
  0x1c   : > { %s437_s27 = sshll.u32 %s2379_s22, 4  ;;  %s2380_s24 = smov 64   ;;  %s438_s27 = int_to_ptr.vmem [resolvable:$true] %s437_s27 }
  0x1d   : > { %p2545_p13 = pnand %p2534_p11, %p2082_p12  ;;  %s2381_s20 = smov 4  }
  0x1e   : > { %s2382_s30 = smov [#allocation4]   ;;  %s458_s15 = sshll.u32 %s3027_s11, 4  ;;  %s459_s15 = int_to_ptr.hbm [resolvable:$true] %s458_s15 }
  0x1f   : > { %s411_s22 = sshll.u32 %s2382_s30, 4  ;;  %s2383_s19 = smov [#allocation9]   ;;  %s412_s22 = int_to_ptr.vmem [resolvable:$true] %s411_s22 }
  0x20   : > { %s460_s14 = sshll.u32 %s2383_s19, 4  ;;  %495 = sbr.rel (%p2530_p10) target bundleno = 2385 (0x951), region = 80  ;;  %s461_s14 = int_to_ptr.vmem [resolvable:$true] %s460_s14 }
  0x21   : > { %s435_s29 = sshll.u32 %s3059_s7, 4  ;;  %s409_s7 = sshll.u32 %s3017_s1, 4  ;;  %s436_s29 = int_to_ptr.hbm [resolvable:$true] %s435_s29  ;;  %s410_s7 = int_to_ptr.hbm [resolvable:$true] %s409_s7 }
  0x22   : > { %2088 = dma.hbm_to_vmem [thread:$0]  (!%p2545_p13), %s436_s29, 256, %s438_s27, [#allocation8], %s2380_s24, %s2380_s24, %s2381_s20  }
  0x23   : > { %2085 = dma.hbm_to_vmem [thread:$0]  (!%p2545_p13), %s410_s7, 16, %s412_s22, [#allocation5]  }
  0x24   : > { %2091 = dma.hbm_to_vmem [thread:$0]  (!%p2545_p13), %s459_s15, 256, %s461_s14, [#allocation8], %s2380_s24, %s2380_s24, %s2381_s20  }
  0x25   : > { %2344 = dma.done.wait (%p2534_p11), [#allocation5], 16  }
  0x26   : > { %2346 = vsyncadd (%p2534_p11), [#allocation5], 4294967280 }
  0x27   : > { %2348 = dma.done.wait (%p2534_p11), [#allocation8], 512  }
  0x28   : > { %2350 = vsyncadd (%p2534_p11), [#allocation8], 4294966784  ;;  %p556_p0 = scmp.lt.s32.totalorder %s2369_s21, 1  ;;  %vm582_vm0 = vcmask 261120   ;;  %v2384_v2 = vmov 32.0   ;;  %v2057_v14 = vld [vmem:[%s3019_s3 + $0x8] sm:$0xff] }
  0x29   : > { %2180 = vrcp.f32 %v2384_v2  ;;  %v2059_v15 = vld [vmem:[%s3021_s5 + $0x8] sm:$0xff]  ;;  %650 = vmatpush.bf16.msra.mxu0 %v2057_v14  ;;  %v2056_v17 = vld [vmem:[%s3019_s3] sm:$0xff]  ;;  %s2385_s15 = smov 104   ;;  %s2386_s19 = smov 120   ;;  %v2388_v53 = vmov 1983009808  }
  0x2a   : > { %s557_s7 = scalar_select %p556_p0, %s2369_s21, 1  ;;  %v2061_v16 = vld [vmem:[#allocation7 + $0x8] sm:$0xff]  ;;  %684 = vmatpush.bf16.msra.mxu1 %v2059_v15  ;;  %v2058_v18 = vld [vmem:[%s3021_s5] sm:$0xff]  ;;  %v741_v54 = vunpack.c.l.s4 %v2388_v53  ;;  %vm736_vm5 = vcmask 1047556   ;;  %v2389_v63 = vmov 1934713408  }
  0x2b   : > { %718 = vmatpush.bf16.msra.mxu2 %v2061_v16  ;;  %v2060_v19 = vld [vmem:[#allocation7] sm:$0xff]  ;;  %v2171_v29 = vld [vmem:[#allocation4] ss:$0 sm:$0xff]  ;;  %s2387_s18 = smov 112   ;;  %vm1102_vm6 = vcmask 64512   ;;  %vm1210_vm7 = vcmask 1043456  }
  0x2c   : > { %s1980_s14 = sshll.u32 %s557_s7, 3  ;;  %v2172_v32 = vld [vmem:[%s3018_s2] ss:$0 sm:$0xff]  ;;  %v2620_v60 = vunpack.c.0.s8 %v741_v54  ;;  %vm569_vm8 = vcmask 72704   ;;  %s2392_s30 = smov 16   ;;  %vm1640_vm10 = vcmask 130048  }
  0x2d   : > { %s2576_s20 = scalar_lea.vmem %s3016_s0, %s1980_s14  ;;  %651 = vmatpush.bf16.msra.mxu0 %v2056_v17  ;;  %v2173_v36 = vld [vmem:[%s3020_s4] ss:$0 sm:$0xff]  ;;  %s2393_s16 = smov 8   ;;  %vm1642_vm11 = vcmask 195584   ;;  %vm1756_vm15 = vcmask 523264  }
  0x2e   : > { %v579_v0 = vld [vmem:[%s2576_s20] sm:$0xff]  ;;  %685 = vmatpush.bf16.msra.mxu1 %v2058_v18  ;;  %s2394_s17 = smov 24   ;;  %s2053_s24 = sshll.u32 %s2369_s21, 3 }
  0x2f   : > { %v583_v1 = vsel %vm582_vm0, %v579_v0, 0.0  ;;  %v2181_v3 = vpop.eup %2180  ;;  %719 = vmatpush.bf16.msra.mxu2 %v2060_v19  ;;  %v2174_v37 = vld [vmem:[%s3022_s6] ss:$0 sm:$0xff]  ;;  %s3063_s22 = sld [smem:[#allocation25_spill]] }
  0x30   : > { %584 = vadd.xlane.f32.xlu0 %v583_v1  ;;  %v587_v4 = vmul.f32 32.0, %v2181_v3  ;;  %vm591_vm1 = vweird.f32 %v2181_v3  ;;  %v2175_v47 = vld [vmem:[%s3024_s8] ss:$0 sm:$0xff] }
  0x32   : > { %v588_v5 = vsub.f32 1.0, %v587_v4 }
  0x34   : > { %v589_v6 = vmul.f32 %v2181_v3, %v588_v5 }
  0x35   : > { %s3064_s7 = smov %s3063_s22 }
  0x36   : > { %v590_v7 = vadd.f32 %v2181_v3, %v589_v6 }
  0x38   : > { %v2580_v8 = vsel %vm591_vm1, %v2181_v3, %v590_v7 }
  0xa3   : > { %v585_v9 = vpop.xlane.xlu0 %584 }
  0xa4   : > { %v593_v10 = vmul.f32 %v2580_v8, %v585_v9 }
  0xa6   : > { %v594_v11 = vsub.f32 %v579_v0, %v593_v10  ;;  %v765_v0 = vunpack.c.l.s4 %v2389_v63 }
  0xa8   : > { %v595_v12 = vmul.f32 %v594_v11, %v594_v11 }
  0xaa   : > { %v596_v13 = vsel %vm582_vm0, %v595_v12, 0.0  ;;  %v2627_v12 = vunpack.c.0.s8 %v765_v0 }
  0xab   : > { %597 = vadd.xlane.f32.xlu0 %v596_v13 }
 0x11e   : > { %v598_v20 = vpop.xlane.xlu0 %597 }
 0x11f   : > { %v599_v21 = vmul.f32 %v598_v20, %v2580_v8 }
 0x121   : > { %v600_v22 = vadd.f32 1e-05, %v599_v21 }
 0x123   : > { %2182 = vrsqrt.f32 %v600_v22  ;;  %vm607_vm3 = vweird.f32 %v600_v22 }
 0x129   : > { %v2183_v23 = vpop.eup %2182 }
 0x12a   : > { %v602_v24 = vmul.f32 %v2183_v23, %v600_v22  ;;  %vm608_vm2 = vweird.f32 %v2183_v23 }
 0x12b   : > { %vm609_vm4 = vmor %vm607_vm3, %vm608_vm2 }
 0x12c   : > { %v603_v25 = vmul.f32 %v2183_v23, %v602_v24 }
 0x12e   : > { %v604_v26 = vmul.f32 0.5, %v603_v25 }
 0x130   : > { %v605_v27 = vsub.f32 1.5, %v604_v26 }
 0x132   : > { %v606_v28 = vmul.f32 %v2183_v23, %v605_v27 }
 0x134   : > { %v610_v30 = vsel %vm609_vm4, %v2183_v23, %v606_v28 }
 0x135   : > { %v611_v31 = vmul.f32 %v610_v30, %v594_v11 }
 0x137   : > { %v615_v33 = vmul.f32 %v2171_v29, %v611_v31 }
 0x139   : > { %v619_v34 = vadd.f32 %v2172_v32, %v615_v33 }
 0x13b   : > { %v620_v35 = vpack.c.bf16 %v619_v34, %v619_v34 }
 0x13d   : > { %1989 = vmatmul.msk.bf16.vlgmr.msra.gmra.mxu0 %vm582_vm0, %v620_v35  ;;  %1998 = vmatmul.msk.bf16.vlgmr.msra.gmra.mxu1 %vm582_vm0, %v620_v35 }
 0x13e   : > { %2007 = vmatmul.msk.bf16.vlgmr.msra.gmra.mxu2 %vm582_vm0, %v620_v35 }
 0x1ba   : > { %v653_v38 = vpop.f32.mrf.mxu0  ;;  %v687_v39 = vpop.f32.mrf.mxu1 }
 0x1bb   : > { %v654_v40 = vadd.f32 %v2173_v36, %v653_v38  ;;  %v688_v41 = vadd.f32 %v2174_v37, %v687_v39 }
 0x1bd   : > { %v657_v42 = vmax.f32 %v654_v40, 0.0  ;;  %v691_v43 = vmax.f32 %v688_v41, 0.0 }
 0x1bf   : > { %857 = vrot.lane.b32.xlu2 %v691_v43, %s2385_s15  ;;  %851 = vrot.lane.b32.xlu1 %v691_v43, %s2386_s19  ;;  %v738_v3 = vrot.slane %v657_v42, 4  ;;  %v862_v6 = vrot.slane %v691_v43, 4 }
 0x1c0   : > { %729 = vrot.lane.b32.xlu0 %v657_v42, %s2387_s18 }
 0x1c1   : > { %v721_v44 = vpop.f32.mrf.mxu2 }
 0x1c2   : > { %v655_v45 = vpop.f32.mrf.mxu0  ;;  %v689_v46 = vpop.f32.mrf.mxu1  ;;  %v2612_v49 = vadd.f32 %v2175_v47, %v721_v44 }
 0x1c4   : > { %v986_v35 = vrot.slane %v2612_v49, 4 }
 0x1c7   : > { %854 = vrot.lane.b32.xlu1 %v691_v43, %s2387_s18  ;;  %726 = vrot.lane.b32.xlu2 %v657_v42, %s2386_s19 }
 0x1c9   : > { %v723_v48 = vpop.f32.mrf.mxu2 }
 0x1cf   : > { %732 = vrot.lane.b32.xlu1 %v657_v42, %s2385_s15  ;;  %975 = vrot.lane.b32.xlu2 %v2612_v49, %s2386_s19 }
 0x1d7   : > { %978 = vrot.lane.b32.xlu1 %v2612_v49, %s2387_s18  ;;  %981 = vrot.lane.b32.xlu2 %v2612_v49, %s2385_s15  ;;  %s1861_s15 = scalar_lea.hbm %s3063_s22, %s2053_s24 }
 0x1d8   : > { %s1865_s23 = sshll.u32 %s1861_s15, 4  ;;  %s1866_s23 = int_to_ptr.hbm [resolvable:$true] %s1865_s23 }
 0x219   : > { %v858_v50 = vpop.permute.xlu2 %857 }
 0x21a   : > { %v872_v57 = vrot.slane %v858_v50, 4 }
 0x221   : > { %v2617_v51 = vpop.permute.xlu2 %726 }
 0x222   : > { %v750_v36 = vrot.slane %v2617_v51, 4 }
 0x229   : > { %v976_v52 = vpop.permute.xlu2 %975 }
 0x22a   : > { %v998_v1 = vrot.slane %v976_v52, 4 }
 0x231   : > { %v852_v55 = vpop.permute.xlu1 %851  ;;  %v982_v59 = vpop.permute.xlu2 %981 }
 0x232   : > { %v874_v56 = vrot.slane %v852_v55, 4  ;;  %v730_v61 = vpop.permute.xlu0 %729  ;;  %v873_v62 = vsel %vm736_vm5, %v872_v57, %v852_v55  ;;  %v996_v4 = vrot.slane %v982_v59, 4  ;;  %v999_v10 = vsel %vm736_vm5, %v982_v59, %v998_v1 }
 0x233   : > { %v735_v5 = vrot.slane %v730_v61, 4  ;;  %v879_v7 = vperm.slane %v873_v62, %v2620_v60  ;;  %v739_v9 = vsel %vm736_vm5, %v730_v61, %v738_v3  ;;  %v2635_v20 = vperm.slane %v999_v10, %v2620_v60 }
 0x234   : > { %v875_v58 = vsel %vm736_vm5, %v858_v50, %v874_v56  ;;  %v997_v16 = vsel %vm736_vm5, %v996_v4, %v976_v52  ;;  %v747_v19 = vperm.slane %v739_v9, %v2620_v60 }
 0x235   : > { %v883_v2 = vperm.slane %v875_v58, %v2620_v60  ;;  %v737_v18 = vsel %vm736_vm5, %v735_v5, %v657_v42  ;;  %v884_v22 = vrot.slane %v879_v7, 4  ;;  %v2641_v26 = vperm.slane %v997_v16, %v2620_v60 }
 0x236   : > { %v743_v28 = vperm.slane %v737_v18, %v2620_v60  ;;  %v774_v37 = vrot.slane %v747_v19, 4  ;;  %v1020_v38 = vrot.slane %v2635_v20, 4 }
 0x237   : > { %v896_v15 = vrot.slane %v883_v2, 4  ;;  %v1008_v41 = vrot.slane %v2641_v26, 4 }
 0x238   : > { %v762_v45 = vrot.slane %v743_v28, 4 }
 0x239   : > { %v855_v11 = vpop.permute.xlu1 %854 }
 0x23a   : > { %v860_v13 = vrot.slane %v855_v11, 4  ;;  %v863_v14 = vsel %vm736_vm5, %v855_v11, %v862_v6 }
 0x23b   : > { %v871_v17 = vperm.slane %v863_v14, %v2620_v60 }
 0x23c   : > { %v861_v21 = vsel %vm736_vm5, %v860_v13, %v691_v43 }
 0x23d   : > { %v867_v23 = vperm.slane %v861_v21, %v2620_v60  ;;  %v897_v24 = vsel %vm736_vm5, %v896_v15, %v871_v17  ;;  %v898_v25 = vrot.slane %v871_v17, 4 }
 0x23e   : > { %v903_v27 = vperm.slane %v897_v24, %v2627_v12 }
 0x23f   : > { %v885_v29 = vsel %vm736_vm5, %v884_v22, %v867_v23  ;;  %v886_v30 = vrot.slane %v867_v23, 4  ;;  %v899_v31 = vsel %vm736_vm5, %v883_v2, %v898_v25 }
 0x240   : > { %v891_v32 = vperm.slane %v885_v29, %v2627_v12  ;;  %v907_v33 = vperm.slane %v899_v31, %v2627_v12  ;;  %v912_v34 = vrot.slane %v903_v27, 4 }
 0x241   : > { %v887_v39 = vsel %vm736_vm5, %v879_v7, %v886_v30  ;;  %v733_v40 = vpop.permute.xlu1 %732 }
 0x242   : > { %v895_v42 = vperm.slane %v887_v39, %v2627_v12  ;;  %v908_v43 = vrot.slane %v891_v32, 4  ;;  %v914_v44 = vrot.slane %v907_v33, 4  ;;  %v913_v46 = vsel %vm736_vm5, 0.0, %v912_v34 }
 0x243   : > { %v748_v47 = vrot.slane %v733_v40, 4  ;;  %v751_v48 = vsel %vm736_vm5, %v733_v40, %v750_v36 }
 0x244   : > { %v910_v50 = vrot.slane %v895_v42, 4  ;;  %v915_v52 = vsel %vm736_vm5, 0.0, %v914_v44  ;;  %v927_v53 = vsel %vm736_vm5, %v914_v44, %v903_v27  ;;  %v759_v54 = vperm.slane %v751_v48, %v2620_v60 }
 0x245   : > { %v2661_v55 = vperm.slane %v927_v53, %v2620_v60  ;;  %v932_v56 = vrot.slane %v915_v52, 4  ;;  %v749_v57 = vsel %vm736_vm5, %v748_v47, %v2617_v51  ;;  %v909_v58 = vsel %vm736_vm5, 0.0, %v908_v43 }
 0x246   : > { %v911_v59 = vsel %vm736_vm5, 0.0, %v910_v50  ;;  %v755_v61 = vperm.slane %v749_v57, %v2620_v60  ;;  %v772_v62 = vrot.slane %v759_v54, 4  ;;  %v775_v63 = vsel %vm736_vm5, %v759_v54, %v774_v37 }
 0x247   : > { %v921_v0 = vrot.slane %v911_v59, 4  ;;  %v933_v1 = vsel %vm736_vm5, %v932_v56, %v913_v46  ;;  %v783_v2 = vperm.slane %v775_v63, %v2627_v12  ;;  %v916_v3 = vsel %vm736_vm5, %v910_v50, %v891_v32 }
 0x248   : > { %v760_v4 = vrot.slane %v755_v61, 4  ;;  %v763_v5 = vsel %vm736_vm5, %v755_v61, %v762_v45  ;;  %v773_v51 = vsel %vm736_vm5, %v772_v62, %v747_v19  ;;  %v920_v6 = vperm.slane %v916_v3, %v2620_v60 }
 0x249   : > { %v771_v7 = vperm.slane %v763_v5, %v2627_v12  ;;  %v779_v9 = vperm.slane %v773_v51, %v2627_v12  ;;  %v790_v10 = vrot.slane %v783_v2, 4  ;;  %v979_v11 = vpop.permute.xlu1 %978  ;;  %v922_v13 = vsel %vm736_vm5, %v921_v0, %v909_v58 }
 0x24a   : > { %v761_v14 = vsel %vm736_vm5, %v760_v4, %v743_v28  ;;  %v984_v15 = vrot.slane %v979_v11, 4  ;;  %v987_v16 = vsel %vm736_vm5, %v979_v11, %v986_v35  ;;  %v926_v17 = vperm.slane %v922_v13, %v2620_v60 }
 0x24b   : > { %v767_v18 = vperm.slane %v761_v14, %v2627_v12  ;;  %v786_v19 = vrot.slane %v771_v7, 4  ;;  %v788_v21 = vrot.slane %v779_v9, 4  ;;  %v791_v22 = vsel %vm736_vm5, 0.0, %v790_v10 }
 0x24c   : > { %v803_v23 = vsel %vm736_vm5, %v790_v10, %v779_v9  ;;  %v808_v24 = vrot.slane %v791_v22, 4  ;;  %v985_v25 = vsel %vm736_vm5, %v984_v15, %v2612_v49  ;;  %v995_v27 = vperm.slane %v987_v16, %v2620_v60 }
 0x24d   : > { %v784_v28 = vrot.slane %v767_v18, 4  ;;  %v2688_v29 = vsel %vm736_vm5, 0.0, %v786_v19  ;;  %v789_v30 = vsel %vm736_vm5, 0.0, %v788_v21  ;;  %v792_v31 = vsel %vm736_vm5, %v786_v19, %v767_v18 }
 0x24e   : > { %v2693_v32 = vperm.slane %v792_v31, %v2620_v60  ;;  %v797_v33 = vrot.slane %v2688_v29, 4  ;;  %v2697_v34 = vperm.slane %v803_v23, %v2620_v60  ;;  %v809_v49 = vsel %vm736_vm5, %v808_v24, %v789_v30 }
 0x24f   : > { %v785_v35 = vsel %vm736_vm5, 0.0, %v784_v28  ;;  %v2702_v36 = vperm.slane %v809_v49, %v2620_v60  ;;  %v991_v37 = vperm.slane %v985_v25, %v2620_v60  ;;  %v1021_v39 = vsel %vm736_vm5, %v1020_v38, %v995_v27 }
 0x250   : > { %v828_v40 = vrot.slane %v2697_v34, 4  ;;  %v1022_v42 = vrot.slane %v995_v27, 4  ;;  %v1027_v43 = vperm.slane %v1021_v39, %v2627_v12  ;;  %v937_v44 = vperm.slane %v933_v1, %v2620_v60 }
 0x251   : > { %v1009_v45 = vsel %vm736_vm5, %v1008_v41, %v991_v37  ;;  %v1010_v46 = vrot.slane %v991_v37, 4  ;;  %v940_v47 = vrot.slane %v920_v6, 4  ;;  %v952_v48 = vrot.slane %v2661_v55, 4 }
 0x252   : > { %v1015_v50 = vperm.slane %v1009_v45, %v2627_v12  ;;  %v1023_v52 = vsel %vm736_vm5, %v2635_v20, %v1022_v42  ;;  %v1036_v38 = vrot.slane %v1027_v43, 4  ;;  %v938_v53 = vrot.slane %v926_v17, 4 }
 0x253   : > { %v1011_v54 = vsel %vm736_vm5, %v2641_v26, %v1010_v46  ;;  %v1031_v56 = vperm.slane %v1023_v52, %v2627_v12  ;;  %v941_v57 = vsel %vm736_vm5, %v926_v17, %v940_v47  ;;  %v953_v41 = vsel %vm736_vm5, %v937_v44, %v952_v48 }
 0x254   : > { %v1019_v58 = vperm.slane %v1011_v54, %v2627_v12  ;;  %v1032_v59 = vrot.slane %v1015_v50, 4  ;;  %v1037_v61 = vsel %vm736_vm5, 0.0, %v1036_v38  ;;  %v949_v62 = vperm.slane %v941_v57, %v2627_v12 }
 0x255   : > { %v1038_v63 = vrot.slane %v1031_v56, 4  ;;  %v961_v20 = vperm.slane %v953_v41, %v2627_v12  ;;  %v939_v0 = vsel %vm736_vm5, %v938_v53, %v920_v6  ;;  %v950_v1 = vrot.slane %v937_v44, 4 }
 0x256   : > { %v1033_v26 = vsel %vm736_vm5, 0.0, %v1032_v59  ;;  %v1034_v2 = vrot.slane %v1019_v58, 4  ;;  %v945_v3 = vperm.slane %v939_v0, %v2627_v12  ;;  %v968_v4 = vrot.slane %v949_v62, 4 }
 0x257   : > { %v1039_v5 = vsel %vm736_vm5, 0.0, %v1038_v63  ;;  %v1051_v51 = vsel %vm736_vm5, %v1038_v63, %v1027_v43  ;;  %v966_v7 = vrot.slane %v961_v20, 4  ;;  %v951_v9 = vsel %vm736_vm5, %v950_v1, %v2661_v55 }
 0x258   : > { %v1035_v10 = vsel %vm736_vm5, 0.0, %v1034_v2  ;;  %v1040_v11 = vsel %vm736_vm5, %v1034_v2, %v1015_v50  ;;  %v2733_v6 = vperm.slane %v1051_v51, %v2620_v60  ;;  %v1056_v13 = vrot.slane %v1039_v5, 4 }
 0x259   : > { %v1044_v14 = vperm.slane %v1040_v11, %v2620_v60  ;;  %v1045_v15 = vrot.slane %v1035_v10, 4  ;;  %v967_v16 = vsel %vm736_vm5, %v966_v7, %v949_v62  ;;  %v957_v17 = vperm.slane %v951_v9, %v2627_v12 }
 0x25a   : > { %v1057_v18 = vsel %vm736_vm5, %v1056_v13, %v1037_v61  ;;  %v1076_v19 = vrot.slane %v2733_v6, 4  ;;  %v2740_v55 = vpack.c.bf16 %v967_v16, %v967_v16  ;;  %v969_v21 = vsel %vm736_vm5, %v961_v20, %v968_v4 }
 0x25b   : > { %v1061_v22 = vperm.slane %v1057_v18, %v2620_v60  ;;  %v962_v23 = vrot.slane %v957_v17, 4  ;;  %v2744_v24 = vpack.c.bf16 %v969_v21, %v969_v21  ;;  %v964_v25 = vrot.slane %v945_v3, 4 }
 0x25c   : > { %v1145_v27 = vsel %vm1102_vm6, %v2740_v55, 0  ;;  %v798_v28 = vsel %vm736_vm5, %v797_v33, %v785_v35  ;;  %v816_v29 = vrot.slane %v2693_v32, 4  ;;  %v829_v30 = vsel %vm736_vm5, %v2702_v36, %v828_v40 }
 0x25d   : > { %1154 = vmatpush.bf16.xpose.msrb.mxu1 %v1145_v27  ;;  %v963_v31 = vsel %vm736_vm5, %v962_v23, %v945_v3  ;;  %v1164_v49 = vsel %vm1102_vm6, %v2744_v24, 0  ;;  %v965_v37 = vsel %vm736_vm5, %v957_v17, %v964_v25  ;;  %v802_v39 = vperm.slane %v798_v28, %v2620_v60 }
 0x25e   : > { %v2757_v42 = vpack.c.bf16 %v963_v31, %v963_v31  ;;  %1173 = vmatpush.bf16.xpose.msrb.mxu2 %v1164_v49  ;;  %v2759_v43 = vpack.c.bf16 %v965_v37, %v965_v37  ;;  %v837_v33 = vperm.slane %v829_v30, %v2627_v12  ;;  %v826_v35 = vrot.slane %v2702_v36, 4 }
 0x25f   : > { %v817_v40 = vsel %vm736_vm5, %v802_v39, %v816_v29  ;;  %v814_v44 = vrot.slane %v802_v39, 4  ;;  %v1046_v45 = vsel %vm736_vm5, %v1045_v15, %v1033_v26  ;;  %v1064_v46 = vrot.slane %v1044_v14, 4 }
 0x260   : > { %v1107_v47 = vsel %vm1102_vm6, %v2757_v42, 0  ;;  %v1126_v48 = vsel %vm1102_vm6, %v2759_v43, 0  ;;  %v825_v50 = vperm.slane %v817_v40, %v2627_v12  ;;  %v842_v52 = vrot.slane %v837_v33, 4 }
 0x261   : > { %1116 = vmatpush.bf16.xpose.msra.mxu3 %v1107_v47  ;;  %1135 = vmatpush.bf16.xpose.msrb.mxu0 %v1126_v48  ;;  %v815_v36 = vsel %vm736_vm5, %v814_v44, %v2693_v32  ;;  %v827_v38 = vsel %vm736_vm5, %v826_v35, %v2697_v34  ;;  %v1050_v53 = vperm.slane %v1046_v45, %v2620_v60  ;;  %v1074_v2 = vrot.slane %v1061_v22, 4 }
 0x262   : > { %v843_v54 = vsel %vm736_vm5, %v842_v52, %v825_v50  ;;  %v821_v56 = vperm.slane %v815_v36, %v2627_v12  ;;  %v833_v57 = vperm.slane %v827_v38, %v2627_v12  ;;  %v844_v41 = vrot.slane %v825_v50, 4 }
 0x263   : > { %v2778_v58 = vpack.c.bf16 %v843_v54, %v843_v54  ;;  %v1065_v59 = vsel %vm736_vm5, %v1050_v53, %v1064_v46  ;;  %v1077_v61 = vsel %vm736_vm5, %v1061_v22, %v1076_v19  ;;  %v1062_v62 = vrot.slane %v1050_v53, 4 }
 0x264   : > { %v838_v32 = vrot.slane %v833_v57, 4  ;;  %v840_v63 = vrot.slane %v821_v56, 4  ;;  %v845_v34 = vsel %vm736_vm5, %v837_v33, %v844_v41  ;;  %v1073_v20 = vperm.slane %v1065_v59, %v2627_v12 }
 0x265   : > { %2010 = vmatmul.msk.bf16.vlgmr.msrb.gmra.mxu1 %vm1102_vm6, %v2778_v58  ;;  %v2786_v0 = vpack.c.bf16 %v845_v34, %v845_v34  ;;  %v1085_v1 = vperm.slane %v1077_v61, %v2627_v12  ;;  %v1063_v26 = vsel %vm736_vm5, %v1062_v62, %v1044_v14  ;;  %v1075_v11 = vsel %vm736_vm5, %v1074_v2, %v2733_v6 }
 0x266   : > { %v839_v3 = vsel %vm736_vm5, %v838_v32, %v821_v56  ;;  %v841_v4 = vsel %vm736_vm5, %v833_v57, %v840_v63  ;;  %v1069_v5 = vperm.slane %v1063_v26, %v2627_v12  ;;  %v1092_v51 = vrot.slane %v1073_v20, 4 }
 0x267   : > { %v2793_v7 = vpack.c.bf16 %v839_v3, %v839_v3  ;;  %2011 = vmatmul.msk.bf16.vlgmr.msrb.gmra.mxu2 %vm1102_vm6, %v2786_v0  ;;  %v2797_v9 = vpack.c.bf16 %v841_v4, %v841_v4  ;;  %v1090_v10 = vrot.slane %v1085_v1, 4  ;;  %v1081_v13 = vperm.slane %v1075_v11, %v2627_v12 }
 0x268   : > { %v1088_v14 = vrot.slane %v1069_v5, 4  ;;  %v1093_v15 = vsel %vm736_vm5, %v1085_v1, %v1092_v51  ;;  %v2390_v39 = vmov 0.0   ;;  %v1098_v53 = vlaneseq }
 0x269   : > { %2008 = vmatmul.msk.bf16.vlgmr.msra.gmra.mxu3 %vm1102_vm6, %v2793_v7  ;;  %2009 = vmatmul.msk.bf16.vlgmr.msrb.gmra.mxu0 %vm1102_vm6, %v2797_v9  ;;  %v1091_v16 = vsel %vm736_vm5, %v1090_v10, %v1073_v20  ;;  %v1097_v17 = vpack.c.bf16 %v1093_v15, %v1093_v15  ;;  %v1086_v19 = vrot.slane %v1081_v13, 4  ;;  %572 = vst.msk [vmem:[#allocation2 + $0x10] sm:$0xff] %vm569_vm8, %v2390_v39  ;;  %v2391_v10 = vmov 8  }
 0x26a   : > { %v1096_v18 = vpack.c.bf16 %v1091_v16, %v1091_v16  ;;  %v1089_v21 = vsel %vm736_vm5, %v1081_v13, %v1088_v14  ;;  %570 = vst.msk [vmem:[#allocation2] sm:$0xff] %vm569_vm8, %v2390_v39  ;;  %v1099_v54 = vshrl.u32 %v1098_v53, 7  ;;  %v1101_v56 = vand.u32 127, %v1098_v53  ;;  %2168 = vset.pattern.permute.xlu1 %v2391_v10  ;;  %2170 = vset.pattern.permute.xlu0 %v2391_v10 }
 0x26b   : > { %v1206_v6 = vsel %vm1102_vm6, %v1097_v17, 1065369472  ;;  %v1095_v22 = vpack.c.bf16 %v1089_v21, %v1089_v21  ;;  %v1087_v25 = vsel %vm736_vm5, %v1086_v19, %v1069_v5  ;;  %571 = vst.msk [vmem:[#allocation2 + $0x8] sm:$0xff] %vm569_vm8, %v2390_v39  ;;  %2169 = vset.pattern.permute.xlu2 %v2391_v10 }
 0x26c   : > { %v1204_v23 = vsel %vm1102_vm6, %v1096_v18, 1065369472  ;;  %v1265_v27 = vsel %vm1210_vm7, %v1206_v6, 0  ;;  %v1094_v29 = vpack.c.bf16 %v1087_v25, %v1087_v25  ;;  %573 = vst.msk [vmem:[#allocation2 + $0x18] sm:$0xff] %vm569_vm8, %v2390_v39  ;;  %vm1179_vm9 = vcmp.le.s32.totalorder %v1101_v56, %v1099_v54 }
 0x26d   : > { %v1247_v28 = vsel %vm1210_vm7, %v1204_v23, 0  ;;  %1274 = vmatpush.bf16.msra.mxu2 %v1265_v27  ;;  %v1202_v30 = vsel %vm1102_vm6, %v1095_v22, 1065369472 }
 0x26e   : > { %1256 = vmatpush.bf16.msra.mxu1 %v1247_v28  ;;  %v1229_v31 = vsel %vm1210_vm7, %v1202_v30, 0  ;;  %v1200_v49 = vsel %vm1102_vm6, %v1094_v29, 1065369472 }
 0x26f   : > { %1238 = vmatpush.bf16.msra.mxu0 %v1229_v31  ;;  %v1211_v37 = vsel %vm1210_vm7, %v1200_v49, 0 }
 0x270   : > { %1220 = vmatpush.bf16.msrb.mxu3 %v1211_v37  ;;  %v2822_v33 = vld [vmem:[#allocation2 + $0x10] sm:$0xff] }
 0x271   : > { %v1196_v35 = vpack.c.bf16 %v2822_v33, %v2822_v33  ;;  %v2832_v47 = vld [vmem:[#allocation2] sm:$0xff] }
 0x272   : > { %v2827_v44 = vld [vmem:[#allocation2 + $0x8] sm:$0xff]  ;;  %v1194_v50 = vpack.c.bf16 %v2832_v47, %v2832_v47 }
 0x273   : > { %v1313_v40 = vsel %vm1210_vm7, %v1196_v35, 0  ;;  %v1195_v45 = vpack.c.bf16 %v2827_v44, %v2827_v44  ;;  %v2834_v48 = vld [vmem:[#allocation2 + $0x18] sm:$0xff] }
 0x274   : > { %1322 = vmatpush.bf16.msrb.mxu1 %v1313_v40  ;;  %v1197_v52 = vpack.c.bf16 %v2834_v48, %v2834_v48  ;;  %v1281_v36 = vsel %vm1210_vm7, %v1194_v50, 0 }
 0x275   : > { %v1297_v46 = vsel %vm1210_vm7, %v1195_v45, 0  ;;  %1290 = vmatpush.bf16.msra.mxu3 %v1281_v36 }
 0x276   : > { %1306 = vmatpush.bf16.msrb.mxu0 %v1297_v46  ;;  %v1329_v38 = vsel %vm1210_vm7, %v1197_v52, 0 }
 0x277   : > { %1338 = vmatpush.bf16.msrb.mxu2 %v1329_v38 }
 0x2e2   : > { %v1156_v57 = vpop.f32.mrf.mxu1 }
 0x2e3   : > { %v1184_v41 = vsel %vm1179_vm9, %v1156_v57, 0.0 }
 0x2e4   : > { %v1188_v59 = vpack.c.bf16 %v1184_v41, %v1184_v41 }
 0x2e6   : > { %v1137_v61 = vpop.f32.mrf.mxu0  ;;  %2014 = vmatmul.msk.bf16.vlgmr.msra.gmra.mxu1 %vm1102_vm6, %v1188_v59 }
 0x2e7   : > { %v1183_v62 = vsel %vm1179_vm9, %v1137_v61, 0.0  ;;  %1438 = vmatpush.bf16.msra.mxu1 %v1247_v28 }
 0x2e8   : > { %v1187_v32 = vpack.c.bf16 %v1183_v62, %v1183_v62 }
 0x2ea   : > { %v1158_v63 = vpop.f32.mrf.mxu1  ;;  %v1175_v34 = vpop.f32.mrf.mxu2  ;;  %2013 = vmatmul.msk.bf16.vlgmr.msra.gmra.mxu0 %vm1102_vm6, %v1187_v32 }
 0x2eb   : > { %v1185_v20 = vsel %vm1179_vm9, %v1175_v34, 0.0  ;;  %1406 = vmatpush.bf16.msra.mxu0 %v1229_v31 }
 0x2ec   : > { %v1118_v1 = vpop.f32.mrf.mxu3  ;;  %v1189_v26 = vpack.c.bf16 %v1185_v20, %v1185_v20 }
 0x2ed   : > { %v1182_v2 = vsel %vm1179_vm9, %v1118_v1, 0.0 }
 0x2ee   : > { %v1186_v3 = vpack.c.bf16 %v1182_v2, %v1182_v2  ;;  %v1139_v4 = vpop.f32.mrf.mxu0  ;;  %2015 = vmatmul.msk.bf16.vlgmr.msra.gmra.mxu2 %vm1102_vm6, %v1189_v26 }
 0x2ef   : > { %1470 = vmatpush.bf16.msra.mxu2 %v1265_v27 }
 0x2f0   : > { %2012 = vmatmul.msk.bf16.vlgmr.msrb.gmra.mxu3 %vm1102_vm6, %v1186_v3 }
 0x2f1   : > { %1374 = vmatpush.bf16.msrb.mxu3 %v1211_v37 }
 0x2f2   : > { %v1177_v5 = vpop.f32.mrf.mxu2 }
 0x2f4   : > { %v1120_v51 = vpop.f32.mrf.mxu3 }
 0x2f6   : > { %2018 = vmatmul.msk.bf16.vlgmr.msrb.gmra.mxu1 %vm1102_vm6, %v2778_v58 }
 0x2fa   : > { %2017 = vmatmul.msk.bf16.vlgmr.msrb.gmra.mxu0 %vm1102_vm6, %v2797_v9 }
 0x2fe   : > { %2019 = vmatmul.msk.bf16.vlgmr.msrb.gmra.mxu2 %vm1102_vm6, %v2786_v0 }
 0x300   : > { %2016 = vmatmul.msk.bf16.vlgmr.msra.gmra.mxu3 %vm1102_vm6, %v2793_v7 }
 0x363   : > { %v1258_v11 = vpop.f32.mrf.mxu1 }
 0x367   : > { %v1240_v13 = vpop.f32.mrf.mxu0 }
 0x36b   : > { %v1260_v14 = vpop.f32.mrf.mxu1 }
 0x36f   : > { %v1242_v15 = vpop.f32.mrf.mxu0 }
 0x371   : > { %v1276_v16 = vpop.f32.mrf.mxu2 }
 0x373   : > { %v1222_v17 = vpop.f32.mrf.mxu3  ;;  %v1324_v58 = vpop.f32.mrf.mxu1 }
 0x374   : > { %v1325_v18 = vadd.f32 %v1324_v58, %v1258_v11 }
 0x376   : > { %v1487_v19 = vadd.f32 1e-16, %v1325_v18 }
 0x377   : > { %v1308_v9 = vpop.f32.mrf.mxu0 }
 0x378   : > { %2184 = vrcp.f32 %v1487_v19  ;;  %v1309_v21 = vadd.f32 %v1308_v9, %v1240_v13 }
 0x379   : > { %v1278_v0 = vpop.f32.mrf.mxu2 }
 0x37a   : > { %v1486_v7 = vadd.f32 1e-16, %v1309_v21 }
 0x37b   : > { %v1224_v6 = vpop.f32.mrf.mxu3  ;;  %v1326_v22 = vpop.f32.mrf.mxu1 }
 0x37c   : > { %2186 = vrcp.f32 %v1486_v7 }
 0x37e   : > { %v2185_v23 = vpop.eup %2184 }
 0x37f   : > { %1505 = vperm.xlu1 %2168, %v2185_v23   ;;  %v1310_v25 = vpop.f32.mrf.mxu0 }
 0x381   : > { %v1340_v27 = vpop.f32.mrf.mxu2 }
 0x382   : > { %v1341_v28 = vadd.f32 %v1340_v27, %v1276_v16  ;;  %v2187_v49 = vpop.eup %2186 }
 0x383   : > { %v1292_v29 = vpop.f32.mrf.mxu3 }
 0x384   : > { %v1293_v30 = vadd.f32 %v1292_v29, %v1222_v17  ;;  %v1488_v31 = vadd.f32 1e-16, %v1341_v28 }
 0x386   : > { %v1485_v37 = vadd.f32 1e-16, %v1293_v30  ;;  %2188 = vrcp.f32 %v1488_v31 }
 0x387   : > { %1500 = vperm.xlu1 %2168, %v2187_v49  }
 0x388   : > { %2190 = vrcp.f32 %v1485_v37 }
 0x389   : > { %v1342_v39 = vpop.f32.mrf.mxu2 }
 0x38b   : > { %v1294_v35 = vpop.f32.mrf.mxu3 }
 0x38c   : > { %v2189_v40 = vpop.eup %2188 }
 0x38d   : > { %1510 = vperm.xlu0 %2170, %v2189_v40  }
 0x38e   : > { %v2191_v45 = vpop.eup %2190 }
 0x38f   : > { %1495 = vperm.xlu2 %2169, %v2191_v45  }
 0x3e9   : > { %v1496_v50 = vpop.permute.xlu2 %1495 }
 0x3ea   : > { %v1513_v52 = vmul.f32 %v1496_v50, %v1293_v30 }
 0x3ec   : > { %v1519_v53 = vrot.slane %v1513_v52, 4 }
 0x3f1   : > { %v1506_v46 = vpop.permute.xlu1 %1505 }
 0x3f2   : > { %v1515_v36 = vmul.f32 %v1506_v46, %v1325_v18 }
 0x3f4   : > { %v1517_v54 = vrot.slane %v1515_v36, 4  ;;  %v1520_v56 = vsel %vm736_vm5, %v1515_v36, %v1519_v53 }
 0x3f5   : > { %v1528_v59 = vperm.slane %v1520_v56, %v2620_v60 }
 0x3f6   : > { %v1518_v41 = vsel %vm736_vm5, %v1517_v54, %v1513_v52 }
 0x3f7   : > { %v1524_v63 = vperm.slane %v1518_v41, %v2620_v60  ;;  %v1555_v1 = vrot.slane %v1528_v59, 4 }
 0x3f9   : > { %v1501_v38 = vpop.permute.xlu1 %1500  ;;  %v1543_v3 = vrot.slane %v1524_v63, 4 }
 0x3fa   : > { %v1514_v57 = vmul.f32 %v1501_v38, %v1309_v21 }
 0x3fc   : > { %v1531_v62 = vrot.slane %v1514_v57, 4 }
 0x3ff   : > { %v1511_v61 = vpop.permute.xlu0 %1510 }
 0x400   : > { %v1516_v32 = vmul.f32 %v1511_v61, %v1341_v28 }
 0x402   : > { %v1529_v34 = vrot.slane %v1516_v32, 4  ;;  %v1532_v20 = vsel %vm736_vm5, %v1516_v32, %v1531_v62 }
 0x403   : > { %v1540_v26 = vperm.slane %v1532_v20, %v2620_v60 }
 0x404   : > { %v1530_v2 = vsel %vm736_vm5, %v1529_v34, %v1514_v57 }
 0x405   : > { %v1536_v4 = vperm.slane %v1530_v2, %v2620_v60  ;;  %v1553_v5 = vrot.slane %v1540_v26, 4  ;;  %v1556_v51 = vsel %vm736_vm5, %v1540_v26, %v1555_v1 }
 0x406   : > { %v1564_v10 = vperm.slane %v1556_v51, %v2627_v12 }
 0x407   : > { %v1541_v11 = vrot.slane %v1536_v4, 4  ;;  %v1544_v13 = vsel %vm736_vm5, %v1536_v4, %v1543_v3  ;;  %v1554_v14 = vsel %vm736_vm5, %v1553_v5, %v1528_v59  ;;  %v2200_v4 = vld [vmem:[%s2576_s20] sm:$0xff]  ;;  %s3062_s20 = sld [smem:[#allocation15_spill]] }
 0x408   : > { %v1552_v15 = vperm.slane %v1544_v13, %v2627_v12  ;;  %v1560_v16 = vperm.slane %v1554_v14, %v2627_v12  ;;  %v1571_v17 = vrot.slane %v1564_v10, 4 }
 0x409   : > { %v1542_v58 = vsel %vm736_vm5, %v1541_v11, %v1524_v63 }
 0x40a   : > { %v1548_v18 = vperm.slane %v1542_v58, %v2627_v12  ;;  %v1567_v19 = vrot.slane %v1552_v15, 4  ;;  %v1569_v9 = vrot.slane %v1560_v16, 4  ;;  %v1572_v21 = vsel %vm736_vm5, 0.0, %v1571_v17 }
 0x40b   : > { %v1584_v0 = vsel %vm736_vm5, %v1571_v17, %v1560_v16  ;;  %v1589_v6 = vrot.slane %v1572_v21, 4  ;;  %v2063_v16 = vld [vmem:[#allocation9 + $0x8] sm:$0xff]  ;;  %v2062_v17 = vld [vmem:[#allocation9] sm:$0xff] }
 0x40c   : > { %v1568_v22 = vsel %vm736_vm5, 0.0, %v1567_v19  ;;  %v1565_v7 = vrot.slane %v1548_v18, 4  ;;  %v1570_v23 = vsel %vm736_vm5, 0.0, %v1569_v9  ;;  %v1573_v25 = vsel %vm736_vm5, %v1567_v19, %v1548_v18  ;;  %1707 = vmatpush.bf16.msra.mxu3 %v2063_v16  ;;  %1813 = vmatpush.bf16.msrb.mxu1 %v2063_v16 }
 0x40d   : > { %v1578_v27 = vrot.slane %v1568_v22, 4  ;;  %v1577_v28 = vperm.slane %v1573_v25, %v2620_v60  ;;  %v1588_v29 = vperm.slane %v1584_v0, %v2620_v60  ;;  %v1590_v30 = vsel %vm736_vm5, %v1589_v6, %v1570_v23  ;;  %v2915_v22 = vld [vmem:[%s3025_s9] ss:$0 sm:$0xff]  ;;  %s553_s29 = sand.u32 1, %s3062_s20   ;;  %s2311_s20 = scalar_lea.hbm %s3064_s7, 16 }
 0x40e   : > { %v1566_v31 = vsel %vm736_vm5, 0.0, %v1565_v7  ;;  %v1594_v49 = vperm.slane %v1590_v30, %v2620_v60  ;;  %v2920_v25 = vld [vmem:[%s3026_s10] ss:$0 sm:$0xff]  ;;  %s1979_s27 = sshll.u32 %s553_s29, 3  ;;  %s1850_s28 = scalar_lea.sflag [#allocation6], %s553_s29 }
 0x40f   : > { %v1579_v37 = vsel %vm736_vm5, %v1578_v27, %v1566_v31  ;;  %v1597_v39 = vrot.slane %v1577_v28, 4  ;;  %v1609_v35 = vrot.slane %v1588_v29, 4  ;;  %s555_s19 = scalar_lea.vmem [#allocation10], %s1979_s27 }
 0x410   : > { %v1583_v40 = vperm.slane %v1579_v37, %v2620_v60  ;;  %v1607_v45 = vrot.slane %v1594_v49, 4  ;;  %1708 = vmatpush.bf16.msra.mxu3 %v2062_v17  ;;  %1814 = vmatpush.bf16.msrb.mxu1 %v2062_v17  ;;  %s1863_s18 = sshll.u32 %s555_s19, 4  ;;  %s1864_s18 = int_to_ptr.vmem [resolvable:$true] %s1863_s18 }
 0x411   : > { %v1610_v46 = vsel %vm736_vm5, %v1594_v49, %v1609_v35  ;;  %v2066_v35 = vld [vmem:[%s3029_s13 + $0x10] sm:$0xff] }
 0x412   : > { %v1598_v50 = vsel %vm736_vm5, %v1583_v40, %v1597_v39  ;;  %v1618_v52 = vperm.slane %v1610_v46, %v2627_v12  ;;  %v1595_v36 = vrot.slane %v1583_v40, 4  ;;  %v1608_v38 = vsel %vm736_vm5, %v1607_v45, %v1588_v29  ;;  %v2067_v39 = vld [vmem:[%s3029_s13 + $0x18] sm:$0xff]  ;;  %v2064_v40 = vld [vmem:[%s3029_s13] sm:$0xff] }
 0x413   : > { %v1606_v53 = vperm.slane %v1598_v50, %v2627_v12  ;;  %v1614_v54 = vperm.slane %v1608_v38, %v2627_v12  ;;  %1764 = vmatpush.bf16.msrb.mxu0 %v2067_v39  ;;  %1837 = vmatpush.bf16.msrb.mxu2 %v2067_v39  ;;  %v2943_v45 = vld [vmem:[%s3028_s12] ss:$0 sm:$0xff] }
 0x414   : > { %v1623_v56 = vrot.slane %v1618_v52, 4  ;;  %v1596_v57 = vsel %vm736_vm5, %v1595_v36, %v1577_v28 }
 0x415   : > { %v1602_v41 = vperm.slane %v1596_v57, %v2627_v12  ;;  %v1619_v60 = vrot.slane %v1614_v54, 4  ;;  %v1625_v63 = vrot.slane %v1606_v53, 4 }
 0x416   : > { %v1624_v59 = vsel %vm736_vm5, %v1623_v56, %v1606_v53 }
 0x417   : > { %1632 = vrot.lane.b32.xlu1 %v1624_v59, %s2392_s30  ;;  %v1621_v61 = vrot.slane %v1602_v41, 4  ;;  %v1620_v62 = vsel %vm736_vm5, %v1619_v60, %v1602_v41  ;;  %v1626_v34 = vsel %vm736_vm5, %v1618_v52, %v1625_v63  ;;  %1765 = vmatpush.bf16.msrb.mxu0 %v2066_v35  ;;  %s2305_s30 = sshra.s32 %s1866_s23, 4  ;;  %s2306_s30 = int_to_ptr.hbm [resolvable:$true] %s2305_s30 }
 0x418   : > { %1838 = vmatpush.bf16.msrb.mxu2 %v2066_v35  ;;  %s2307_s21 = scalar_lea.hbm %s2306_s30, 8  ;;  %p2312_p5 = scmp.lt.s32.totalorder %s2306_s30, %s3064_s7 }
 0x419   : > { %v1622_v32 = vsel %vm736_vm5, %v1614_v54, %v1621_v61  ;;  %p2308_p1 = scmp.ne.s32.totalorder %s2306_s30, %s2307_s21  ;;  %p2313_p6 = scmp.lt.s32.totalorder %s2311_s20, %s2307_s21 }
 0x41a   : > { %1628 = vrot.lane.b32.xlu2 %v1622_v32, %s2393_s16 }
 0x41b   : > { %p2309_p2 = pnand %p2308_p1, %p2515_p4  ;;  %p2314_p7 = por %p2313_p6, %p2312_p5 }
 0x41d   : > { %p2310_p3 = pneg %p2309_p2 }
 0x41f   : > { %p2315_p9 = pnand %p2314_p7, %p2310_p3 }
 0x422   : > { %1636 = vrot.lane.b32.xlu2 %v1626_v34, %s2394_s17  ;;  %s3061_s17 = sld [smem:[#allocation24_spill]] }
 0x428   : > { %v2952_v34 = vld [vmem:[%s3061_s17] ss:$0 sm:$0xff] }
 0x448   : > { %1348 = vxpose.xlu2.c.b16.start.end [1/1] (short) (narrow) %v2757_v42, 16 }
 0x474   : > { %v1629_v12 = vpop.permute.xlu2 %1628 }
 0x475   : > { %v1639_v20 = vsel %vm1102_vm6, %v1620_v62, %v1629_v12 }
 0x47c   : > { %v1637_v26 = vpop.permute.xlu2 %1636 }
 0x489   : > { %v1633_v1 = vpop.permute.xlu1 %1632 }
 0x48a   : > { %v1641_v2 = vsel %vm1640_vm10, %v1639_v20, %v1633_v1 }
 0x48b   : > { %v1643_v3 = vsel %vm1642_vm11, %v1641_v2, %v1637_v26 }
 0x48c   : > { %v2901_v5 = vadd.f32 %v2200_v4, %v1643_v3 }
 0x48e   : > { %v1647_v51 = vsel %vm582_vm0, %v2901_v5, 0.0 }
 0x48f   : > { %1648 = vadd.xlane.f32.xlu0 %v1647_v51 }
 0x4b8   : > { %1380 = vxpose.xlu0.c.b16.start.end [1/1] (short) (narrow) %v2759_v43, 16 }
 0x4c8   : > { %1444 = vxpose.xlu0.c.b16.start.end [1/1] (short) (narrow) %v2744_v24, 16 }
 0x4e9   : > { %v1356_v15 = vpop.trf.xlu2 }
 0x4ea   : > { %2020 = vmatmul.msk.bf16.vlgmr.msrb.gmra.mxu3 %vm1102_vm6, %v1356_v15 }
 0x502   : > { %v1649_v42 = vpop.xlane.xlu0 %1648 }
 0x503   : > { %v1650_v10 = vmul.f32 %v1649_v42, %v2580_v8 }
 0x505   : > { %v1651_v11 = vsub.f32 %v2901_v5, %v1650_v10 }
 0x507   : > { %v1652_v13 = vmul.f32 %v1651_v11, %v1651_v11 }
 0x509   : > { %v1653_v14 = vsel %vm582_vm0, %v1652_v13, 0.0 }
 0x50a   : > { %1654 = vadd.xlane.f32.xlu1 %v1653_v14 }
 0x564   : > { %v1388_v37 = vpop.trf.xlu0 }
 0x565   : > { %2021 = vmatmul.msk.bf16.vlgmr.msra.gmra.mxu0 %vm1102_vm6, %v1388_v37 }
 0x56d   : > { %v1376_v30 = vpop.f32.mrf.mxu3 }
 0x56e   : > { %v1476_v31 = vadd.f32 %v1376_v30, %v2832_v47  ;;  %v2065_v47 = vld [vmem:[%s3029_s13 + $0x8] sm:$0xff] }
 0x56f   : > { %1766 = vmatpush.bf16.msrb.mxu0 %v2065_v47  ;;  %1839 = vmatpush.bf16.msrb.mxu2 %v2065_v47 }
 0x570   : > { %1481 = vst.msk [vmem:[#allocation2] sm:$0xff] %vm569_vm8, %v1476_v31 }
 0x573   : > { %1767 = vmatpush.bf16.msrb.mxu0 %v2064_v40  ;;  %1840 = vmatpush.bf16.msrb.mxu2 %v2064_v40 }
 0x575   : > { %v1378_v49 = vpop.f32.mrf.mxu3 }
 0x57d   : > { %v1655_v43 = vpop.xlane.xlu1 %1654 }
 0x57e   : > { %v1656_v24 = vmul.f32 %v1655_v43, %v2580_v8 }
 0x580   : > { %v1657_v58 = vadd.f32 1e-05, %v1656_v24 }
 0x582   : > { %2192 = vrsqrt.f32 %v1657_v58  ;;  %vm1664_vm13 = vweird.f32 %v1657_v58 }
 0x588   : > { %v2193_v18 = vpop.eup %2192 }
 0x589   : > { %v1659_v19 = vmul.f32 %v2193_v18, %v1657_v58  ;;  %vm1665_vm12 = vweird.f32 %v2193_v18 }
 0x58a   : > { %vm1666_vm14 = vmor %vm1664_vm13, %vm1665_vm12 }
 0x58b   : > { %v1660_v9 = vmul.f32 %v2193_v18, %v1659_v19 }
 0x58d   : > { %v1661_v21 = vmul.f32 0.5, %v1660_v9  ;;  %v1452_v9 = vpop.trf.xlu0 }
 0x58e   : > { %2023 = vmatmul.msk.bf16.vlgmr.msra.gmra.mxu2 %vm1102_vm6, %v1452_v9 }
 0x58f   : > { %v1662_v0 = vsub.f32 1.5, %v1661_v21 }
 0x591   : > { %v1663_v6 = vmul.f32 %v2193_v18, %v1662_v0 }
 0x593   : > { %v1667_v7 = vsel %vm1666_vm14, %v2193_v18, %v1663_v6 }
 0x594   : > { %v1668_v23 = vmul.f32 %v1667_v7, %v1651_v11 }
 0x596   : > { %v1672_v27 = vmul.f32 %v2915_v22, %v1668_v23 }
 0x598   : > { %v1676_v28 = vadd.f32 %v2920_v25, %v1672_v27 }
 0x59a   : > { %v1677_v29 = vpack.c.bf16 %v1676_v28, %v1676_v28 }
 0x59c   : > { %2032 = vmatmul.msk.bf16.vlgmr.msra.gmra.mxu3 %vm582_vm0, %v1677_v29 }
 0x5e2   : > { %v1408_v62 = vpop.f32.mrf.mxu0 }
 0x5e3   : > { %v1477_v32 = vadd.f32 %v1408_v62, %v2827_v44 }
 0x5e5   : > { %1482 = vst.msk [vmem:[#allocation2 + $0x8] sm:$0xff] %vm569_vm8, %v1477_v32 }
 0x5ea   : > { %v1410_v63 = vpop.f32.mrf.mxu0 }
 0x611   : > { %v1472_v35 = vpop.f32.mrf.mxu2 }
 0x612   : > { %v1479_v47 = vadd.f32 %v1472_v35, %v2834_v48 }
 0x614   : > { %1484 = vst.msk [vmem:[#allocation2 + $0x18] sm:$0xff] %vm569_vm8, %v1479_v47 }
 0x619   : > { %v1474_v40 = vpop.f32.mrf.mxu2 }
 0x61f   : > { %v1710_v46 = vpop.f32.mrf.mxu3 }
 0x620   : > { %v1711_v50 = vadd.f32 %v2943_v45, %v1710_v46 }
 0x622   : > { %v1715_v52 = vmul.f32 %v1711_v50, %v1711_v50  ;;  %v1714_v41 = vmul.f32 0.5, %v1711_v50 }
 0x624   : > { %v1716_v36 = vmul.f32 %v1715_v52, %v1711_v50 }
 0x626   : > { %v1717_v38 = vmul.f32 0.044715, %v1716_v36 }
 0x627   : > { %v1712_v53 = vpop.f32.mrf.mxu3 }
 0x628   : > { %v1718_v54 = vadd.f32 %v1717_v38, %v1711_v50 }
 0x62a   : > { %v1719_v56 = vmul.f32 0.7978846, %v1718_v54 }
 0x62c   : > { %2194 = vtanh.f32 %v1719_v56 }
 0x632   : > { %v2195_v57 = vpop.eup %2194 }
 0x633   : > { %v1721_v60 = vadd.f32 1.0, %v2195_v57 }
 0x635   : > { %v1722_v59 = vmul.f32 %v1721_v60, %v1714_v41 }
 0x637   : > { %v1723_v61 = vpack.c.bf16 %v1722_v59, %v1722_v59 }
 0x639   : > { %2049 = vmatmul.msk.bf16.vlgmr.msrb.gmra.mxu0 %vm1756_vm15, %v1723_v61 }
 0x6b6   : > { %v1769_v12 = vpop.f32.mrf.mxu0 }
 0x6b7   : > { %v1773_v20 = vadd.f32 %v1769_v12, %v2901_v5 }
 0x6b9   : > { %v2956_v1 = vadd.f32 %v2952_v34, %v1773_v20 }
 0x6bb   : > { %v1779_v26 = vsel %vm582_vm0, %v2956_v1, 0.0 }
 0x6bc   : > { %1780 = vadd.xlane.f32.xlu2 %v1779_v26 }
 0x6be   : > { %v1771_v2 = vpop.f32.mrf.mxu0 }
 0x72f   : > { %v1781_v44 = vpop.xlane.xlu2 %1780 }
 0x730   : > { %v1782_v3 = vmul.f32 %v1781_v44, %v2580_v8 }
 0x732   : > { %v1783_v4 = vsub.f32 %v2956_v1, %v1782_v3 }
 0x734   : > { %v1784_v51 = vmul.f32 %v1783_v4, %v1783_v4 }
 0x736   : > { %v1785_v42 = vsel %vm582_vm0, %v1784_v51, 0.0 }
 0x737   : > { %1786 = vadd.xlane.f32.xlu1 %v1785_v42 }
 0x771   : > { %1412 = vxpose.xlu1.c.b16.start.end [1/1] (short) (narrow) %v2740_v55, 16 }
 0x7aa   : > { %v1787_v5 = vpop.xlane.xlu1 %1786 }
 0x7ab   : > { %v1788_v10 = vmul.f32 %v1787_v5, %v2580_v8 }
 0x7ad   : > { %v1789_v11 = vadd.f32 1e-05, %v1788_v10 }
 0x7af   : > { %2196 = vrsqrt.f32 %v1789_v11  ;;  %vm1796_vm2 = vweird.f32 %v1789_v11 }
 0x7b5   : > { %v2197_v13 = vpop.eup %2196 }
 0x7b6   : > { %v1791_v14 = vmul.f32 %v2197_v13, %v1789_v11  ;;  %vm1797_vm1 = vweird.f32 %v2197_v13 }
 0x7b7   : > { %vm1798_vm3 = vmor %vm1796_vm2, %vm1797_vm1 }
 0x7b8   : > { %v1792_v15 = vmul.f32 %v2197_v13, %v1791_v14 }
 0x7ba   : > { %v1793_v16 = vmul.f32 0.5, %v1792_v15 }
 0x7bc   : > { %v1794_v17 = vsub.f32 1.5, %v1793_v16 }
 0x7be   : > { %v1795_v43 = vmul.f32 %v2197_v13, %v1794_v17 }
 0x7c0   : > { %v1799_v24 = vsel %vm1798_vm3, %v2197_v13, %v1795_v43 }
 0x7c1   : > { %v1800_v18 = vmul.f32 %v1799_v24, %v1783_v4 }
 0x7c3   : > { %v1801_v55 = vmul.f32 %v2915_v22, %v1800_v18 }
 0x7c5   : > { %v1802_v8 = vadd.f32 %v2920_v25, %v1801_v55 }
 0x7c7   : > { %v1803_v19 = vpack.c.bf16 %v1802_v8, %v1802_v8 }
 0x81d   : > { %v1420_v58 = vpop.trf.xlu1 }
 0x81e   : > { %2022 = vmatmul.msk.bf16.vlgmr.msra.gmra.mxu1 %vm1102_vm6, %v1420_v58 }
 0x82e   : > { %2050 = vmatmul.msk.bf16.vlgmr.msrb.gmra.mxu1 %vm582_vm0, %v1803_v19 }
 0x89b   : > { %v1440_v21 = vpop.f32.mrf.mxu1 }
 0x89c   : > { %v1478_v0 = vadd.f32 %v1440_v21, %v2822_v33 }
 0x89e   : > { %1483 = vst.msk [vmem:[#allocation2 + $0x10] sm:$0xff] %vm569_vm8, %v1478_v0 }
 0x8a3   : > { %v1442_v6 = vpop.f32.mrf.mxu1 }
 0x8ab   : > { %v1816_v7 = vpop.f32.mrf.mxu1 }
 0x8ac   : > { %v1817_v23 = vadd.f32 %v2943_v45, %v1816_v7 }
 0x8ae   : > { %v1821_v27 = vmul.f32 %v1817_v23, %v1817_v23  ;;  %v1820_v49 = vmul.f32 0.5, %v1817_v23 }
 0x8b0   : > { %v1822_v28 = vmul.f32 %v1821_v27, %v1817_v23 }
 0x8b2   : > { %v1823_v22 = vmul.f32 0.044715, %v1822_v28 }
 0x8b3   : > { %v1818_v25 = vpop.f32.mrf.mxu1 }
 0x8b4   : > { %v1824_v29 = vadd.f32 %v1823_v22, %v1817_v23 }
 0x8b6   : > { %v1825_v30 = vmul.f32 0.7978846, %v1824_v29 }
 0x8b8   : > { %2198 = vtanh.f32 %v1825_v30 }
 0x8be   : > { %v2199_v31 = vpop.eup %2198 }
 0x8bf   : > { %v1827_v37 = vadd.f32 1.0, %v2199_v31 }
 0x8c1   : > { %v1828_v39 = vmul.f32 %v1827_v37, %v1820_v49 }
 0x8c3   : > { %v1829_v33 = vpack.c.bf16 %v1828_v39, %v1828_v39 }
 0x8c5   : > { %2051 = vmatmul.msk.bf16.vlgmr.msrb.gmra.mxu2 %vm1756_vm15, %v1829_v33 }
 0x948   : > { %v1842_v45 = vpop.f32.mrf.mxu2 }
 0x949   : > { %v1846_v46 = vadd.f32 %v1842_v45, %v2956_v1 }
 0x94b   : > { %v1847_v50 = vadd.f32 %v2952_v34, %v1846_v46 }
 0x94d   : > { %1848 = vst.msk [vmem:[%s555_s19] sm:$0xff] %vm582_vm0, %v1847_v50 }
 0x94e   : > { %2318 = shalt.err (!%p2315_p9)
}
 0x94f   : > { %2080 = dma.vmem_to_hbm [thread:$0]  (%p2515_p4), %s1864_s18, 128, %s1866_s23, %s1850_s28  }
 0x950   : > { %v1844_v48 = vpop.f32.mrf.mxu2 }
 0x951 PF: > { %s3066_s29 = sld [smem:[#allocation18_spill]] }
 0x952   : > { %s3067_s26 = sld [smem:[#allocation14_spill]] }
 0x957   : > { %p2102_p10 = scmp.ge.s32.totalorder %s3066_s29, 2 }
 0x958   : > { %s1877_s22 = sand.u32 1, %s3067_s26  }
 0x959   : > { %p2093_p11 = pnand %p2102_p10, %p2522_p8  ;;  %s1878_s15 = scalar_lea.sflag [#allocation6], %s1877_s22 }
 0x95b   : > { %p2094_p12 = pneg %p2093_p11 }
 0x95d   : > { %2352 = dma.done.wait (%p2094_p12), %s1878_s15, 128  }
 0x95e   : > { %2354 = vsyncadd (%p2094_p12), %s1878_s15, 4294967168  ;;  %s30_s23 = sadd.s32 1, %s3066_s29   ;;  %s3069_s18 = sld [smem:[#allocation15_spill]] }
 0x95f   : > { %p27_p13 = scmp.ge.s32.totalorder %s30_s23, 4   ;;  %s3070_s19 = sld [smem:[#allocation16_spill]] }
 0x960   : > { %s3071_s20 = sld [smem:[#allocation22_spill]] }
 0x961   : > { %s3072_s21 = sld [smem:[#allocation17_spill]]  ;;  %29 = sbr.rel (!%p27_p13) target bundleno = 10 (0xa), region = 132 }
 0x962   : > { %s3073_s22 = sld [smem:[#allocation19_spill]] }
 0x966   :  { %1884 = vsyncpa [#allocation5], 1 }
 0x967   :  { %1886 = vsyncpa [#allocation5 + $0x1], 1 }
 0x968   :  { %1887 = vsyncpa [#allocation8], 1 }
 0x969   :  { %1888 = vsyncpa [#allocation6], 1 }
 0x96a   :  { %1890 = vsyncpa [#allocation6 + $0x1], 1 }

</bundles_post_ra>
